<compile_context>
chip_gen: v7x
topology: tpu7x:2x2x1
jax: 0.10.0
libtpu: 0.0.40
codegen_flags: <defaults>
</compile_context>

<pallas_src>
import math

import jax
import jax.numpy as jnp
from jax.experimental import pallas as pl
from jax.experimental.pallas import tpu as pltpu

# ---- hyper-parameters of the concrete instantiation (small shapes) ----
B = 2          # batch
CIN = 4        # one-hot DNA channels
L = 16         # sequence length
KS = 3         # conv kernel size (padding=1 -> same length)
D = 32         # d_model
H = 4          # attention heads
DH = D // H    # head dim
DFF = 64       # FFN hidden dim
NLAYERS = 2    # encoder layers
NCLASS = 2     # generator classes
EPS = 1e-6

# TODO(synk): dropout layers of the reference encoder are identity in eval mode and are omitted.
# TODO(synk): pre-norm ("annotated transformer") encoder + final LayerNorm is used, matching the
#             injected sub-modules of this DNA model, not torch.nn.TransformerEncoder's post-norm.


# ----------------------------------------------------------------------
# Fused forward kernel: one grid step == one encoder layer.
#   step 0     : conv (im2col matmul) + ReLU + positional encoding -> x scratch
#   every step : one pre-norm encoder layer (MHSA + FFN) updating x scratch
#   last step  : final LayerNorm + generator (Linear + log_softmax) -> output
# ----------------------------------------------------------------------
def _forward_kernel(patches_ref, pe_ref, bias_ref, conv_w_ref, gvec_ref, gen_w_ref,
                    lvec_ref, wqkv_ref, wo_ref, w1_ref, w2_ref,
                    o_ref, x_ref):
    f32 = jnp.float32
    layer = pl.program_id(0)

    def layernorm(v, g, b):
        mu = jnp.mean(v, axis=-1, keepdims=True)
        var = jnp.mean((v - mu) ** 2, axis=-1, keepdims=True)
        return (v - mu) * jax.lax.rsqrt(var + EPS) * g + b

    def matmul(a, w):  # a @ w with f32 accumulation on the MXU
        return jax.lax.dot_general(a, w, (((1,), (0,)), ((), ())),
                                   preferred_element_type=f32)

    gv = gvec_ref[...]                                   # (4, D) packed global vectors

    # ---- step 0: convolution + bias + ReLU, then additive sinusoidal PE
    @pl.when(layer == 0)
    def _():
        c = matmul(patches_ref[...], conv_w_ref[...]) + gv[0:1, :]
        x_ref[...] = jnp.maximum(c, 0.0) + pe_ref[...]   # (B*L, D)

    # ---- per-layer packed vectors (one DMA'd slab instead of 8 tiny ones)
    lv = lvec_ref[...]                                   # (8, 3D)
    ln1_g, ln1_b = lv[0:1, :D], lv[1:2, :D]
    bqkv = lv[2:3, :]                                    # (1, 3D) (Q part pre-scaled)
    bo = lv[3:4, :D]
    ln2_g, ln2_b = lv[4:5, :D], lv[5:6, :D]
    b1 = lv[6:7, :DFF]
    b2 = lv[7:8, :D]

    x = x_ref[...]                                       # (B*L, D) resident activation
    bias = bias_ref[...]                                 # (B, L) additive key-mask bias

    # -- self-attention sublayer ---------------------------------------
    xn = layernorm(x, ln1_g, ln1_b)
    qkv = matmul(xn, wqkv_ref[...]) + bqkv               # (B*L, 3D), Q already * 1/sqrt(DH)

    batch_rows = []
    for b in range(B):                                   # static unroll (B*H tiny)
        r0 = b * L
        bias_b = bias[b:b + 1, :]                        # (1, L) broadcast over queries
        head_cols = []
        for h in range(H):
            c0 = h * DH
            # single combined-offset slices straight out of the packed QKV slab
            q_h = qkv[r0:r0 + L, 0 * D + c0:0 * D + c0 + DH]
            k_h = qkv[r0:r0 + L, 1 * D + c0:1 * D + c0 + DH]
            v_h = qkv[r0:r0 + L, 2 * D + c0:2 * D + c0 + DH]
            # scores = q_h @ k_h^T (contract head dim, no explicit transpose)
            s = jax.lax.dot_general(q_h, k_h, (((1,), (1,)), ((), ())),
                                    preferred_element_type=f32)
            s = s + bias_b
            m = jnp.max(s, axis=-1, keepdims=True)
            p = jnp.exp(s - m)
            p = p / jnp.sum(p, axis=-1, keepdims=True)   # exact divide (off the bottleneck)
            head_cols.append(matmul(p, v_h))             # (L, DH)
        # heads land in their natural 8-lane blocks of an (L, D) tile
        batch_rows.append(jnp.concatenate(head_cols, axis=1))
    attn = jnp.concatenate(batch_rows, axis=0)           # (B*L, D)
    x = matmul(attn, wo_ref[...]) + bo + x               # ONE Wo matmul per layer + residual

    # -- feed-forward sublayer ------------------------------------------
    xn = layernorm(x, ln2_g, ln2_b)
    hid = jnp.maximum(matmul(xn, w1_ref[...]) + b1, 0.0)
    x = matmul(hid, w2_ref[...]) + b2 + x                # residual
    x_ref[...] = x

    # ---- last step: final LayerNorm + generator (Linear -> log_softmax)
    @pl.when(layer == NLAYERS - 1)
    def _():
        xf = layernorm(x, gv[1:2, :], gv[2:3, :])
        y = matmul(xf, gen_w_ref[...]) + gv[3:4, :NCLASS]
        m = jnp.max(y, axis=-1, keepdims=True)
        lse = jnp.log(jnp.sum(jnp.exp(y - m), axis=-1, keepdims=True)) + m
        # NCLASS=2-lane output lowers to a masked store; negligible at this size.
        o_ref[...] = (y - lse).astype(o_ref.dtype)


# ----------------------------------------------------------------------
# Parameter packing for the fused kernel
# ----------------------------------------------------------------------
def pack_params(conv_w, conv_b, wqkv, bqkv, wo, bo,
                ln1_g, ln1_b, ln2_g, ln2_b, w1, b1, w2, b2,
                fin_g, fin_b, gen_w, gen_b):
    """Fold the 1/sqrt(head_dim) scale into the Q columns of wqkv/bqkv and pack the 13 tiny
    bias/gain vectors into two slabs (per-layer (NLAYERS, 8, 3D) + globals (4, D)) so the
    kernel issues 2 DMAs for them instead of 13."""
    scale = 1.0 / math.sqrt(DH)
    wqkv = wqkv.at[:, :, :D].multiply(scale)
    bqkv = bqkv.at[:, :D].multiply(scale)

    wide = 3 * D

    def pad_l(v):                      # (NLAYERS, w) -> (NLAYERS, 3D)
        return jnp.pad(v, ((0, 0), (0, wide - v.shape[-1])))

    layer_vecs = jnp.stack(
        [pad_l(ln1_g), pad_l(ln1_b), pad_l(bqkv), pad_l(bo),
         pad_l(ln2_g), pad_l(ln2_b), pad_l(b1), pad_l(b2)], axis=1)    # (NLAYERS, 8, 3D)

    def pad_g(v):                      # (w,) -> (D,)
        return jnp.pad(v, (0, D - v.shape[0]))

    global_vecs = jnp.stack([pad_g(conv_b), pad_g(fin_g), pad_g(fin_b), pad_g(gen_b)],
                            axis=0)                                     # (4, D)

    return {"conv_w": conv_w, "wqkv": wqkv, "wo": wo, "w1": w1, "w2": w2,
            "gen_w": gen_w, "layer_vecs": layer_vecs, "global_vecs": global_vecs}


def init_params(key):
    def nrm(k, shape, s=0.02):
        return s * jax.random.normal(k, shape, dtype=jnp.float32)

    k = iter(jax.random.split(key, 8))
    # conv weight already in (CIN*KS, D) matmul layout (PyTorch Conv1d weight (D, CIN, KS)
    # flattened CIN-major/KS-minor, then transposed).
    return pack_params(
        conv_w=nrm(next(k), (CIN * KS, D)),
        conv_b=jnp.zeros((D,), jnp.float32),
        wqkv=nrm(next(k), (NLAYERS, D, 3 * D)),
        bqkv=jnp.zeros((NLAYERS, 3 * D), jnp.float32),
        wo=nrm(next(k), (NLAYERS, D, D)),
        bo=jnp.zeros((NLAYERS, D), jnp.float32),
        ln1_g=jnp.ones((NLAYERS, D), jnp.float32),
        ln1_b=jnp.zeros((NLAYERS, D), jnp.float32),
        ln2_g=jnp.ones((NLAYERS, D), jnp.float32),
        ln2_b=jnp.zeros((NLAYERS, D), jnp.float32),
        w1=nrm(next(k), (NLAYERS, D, DFF)),
        b1=jnp.zeros((NLAYERS, DFF), jnp.float32),
        w2=nrm(next(k), (NLAYERS, DFF, D)),
        b2=jnp.zeros((NLAYERS, D), jnp.float32),
        fin_g=jnp.ones((D,), jnp.float32),
        fin_b=jnp.zeros((D,), jnp.float32),
        gen_w=nrm(next(k), (D, NCLASS)),
        gen_b=jnp.zeros((NCLASS,), jnp.float32),
    )


def sinusoidal_pe(length, dim):
    pos = jnp.arange(length, dtype=jnp.float32)[:, None]
    div = jnp.exp(jnp.arange(0, dim, 2, dtype=jnp.float32) * (-math.log(10000.0) / dim))
    pe = jnp.zeros((length, dim), jnp.float32)
    pe = pe.at[:, 0::2].set(jnp.sin(pos * div))
    pe = pe.at[:, 1::2].set(jnp.cos(pos * div))
    return pe


# ----------------------------------------------------------------------
# Forward pass: generator(encoder(pos_embed(convolution(src)), src_mask))
# ----------------------------------------------------------------------
def forward(params, src, src_mask):
    Bb, _, Ll = src.shape

    # tiny XLA preprocessing (layout only): im2col patches, PE table, (B, L) mask bias
    xp = jnp.pad(src, ((0, 0), (0, 0), (1, 1)))
    patches = jnp.stack([xp[:, :, i:i + Ll] for i in range(KS)], axis=-1)  # (B, CIN, L, KS)
    patches = patches.transpose(0, 2, 1, 3).reshape(Bb * Ll, CIN * KS)

    pe = sinusoidal_pe(Ll, D)
    pe_b = jnp.broadcast_to(pe[None], (Bb, Ll, D)).reshape(Bb * Ll, D)

    # additive key-mask bias kept at (B, L); broadcast to (L, L) happens in-kernel
    bias = jnp.where(src_mask.reshape(Bb, Ll) == 0, -1e9, 0.0).astype(jnp.float32)

    const = lambda l: (0, 0)          # resident across the layer grid (DMA'd once)
    per_layer = lambda shape: pl.BlockSpec((None,) + shape, lambda l: (l, 0, 0))

    logp = pl.pallas_call(
        _forward_kernel,
        out_shape=jax.ShapeDtypeStruct((Bb * Ll, NCLASS), jnp.float32),
        grid=(NLAYERS,),
        in_specs=[
            pl.BlockSpec((Bb * Ll, CIN * KS), const),    # im2col patches
            pl.BlockSpec((Bb * Ll, D), const),           # positional encoding
            pl.BlockSpec((Bb, Ll), const),               # additive mask bias
            pl.BlockSpec((CIN * KS, D), const),          # conv weight
            pl.BlockSpec((4, D), const),                 # packed global vectors
            pl.BlockSpec((D, NCLASS), const),            # generator weight
            per_layer((8, 3 * D)),                       # packed per-layer vectors
            per_layer((D, 3 * D)),                       # wqkv (Q pre-scaled)
            per_layer((D, D)),                           # wo
            per_layer((D, DFF)),                         # w1
            per_layer((DFF, D)),                         # w2
        ],
        out_specs=pl.BlockSpec((Bb * Ll, NCLASS), const),
        scratch_shapes=[pltpu.VMEM((Bb * Ll, D), jnp.float32)],   # resident activation
        compiler_params=pltpu.CompilerParams(dimension_semantics=("arbitrary",)),
    )(patches, pe_b, bias,
      params["conv_w"], params["global_vecs"], params["gen_w"],
      params["layer_vecs"], params["wqkv"], params["wo"], params["w1"], params["w2"])

    return logp.reshape(Bb, Ll, NCLASS)


if __name__ == "__main__":
    key = jax.random.PRNGKey(0)
    kp, kx = jax.random.split(key)
    params = init_params(kp)

    # one-hot DNA input in NCL layout: (B, 4, L)
    idx = jax.random.randint(kx, (B, L), 0, 4)
    src = jax.nn.one_hot(idx, CIN, dtype=jnp.float32).transpose(0, 2, 1)
    src_mask = jnp.ones((B, 1, L), dtype=jnp.int32)
    src_mask = src_mask.at[1, 0, L - 4:].set(0)   # mask the tail of the 2nd sequence

    out = jax.jit(forward)(params, src, src_mask)
    jax.block_until_ready(out)
    assert out.shape == (B, L, NCLASS)
    assert bool(jnp.all(jnp.isfinite(out)))
    print("KERNEL_OK")
</pallas_src>

<mosaic_0001>
module attributes {stable_mosaic.version = 11 : i64} {
  func.func @_forward_kernel(%arg0: i32, %arg1: memref<32x12xf32, #tpu.memory_space<vmem>>, %arg2: memref<32x32xf32, #tpu.memory_space<vmem>>, %arg3: memref<2x16xf32, #tpu.memory_space<vmem>>, %arg4: memref<12x32xf32, #tpu.memory_space<vmem>>, %arg5: memref<4x32xf32, #tpu.memory_space<vmem>>, %arg6: memref<32x2xf32, #tpu.memory_space<vmem>>, %arg7: memref<1x8x96xf32, #tpu.memory_space<vmem>>, %arg8: memref<1x32x96xf32, #tpu.memory_space<vmem>>, %arg9: memref<1x32x32xf32, #tpu.memory_space<vmem>>, %arg10: memref<1x32x64xf32, #tpu.memory_space<vmem>>, %arg11: memref<1x64x32xf32, #tpu.memory_space<vmem>>, %arg12: memref<32x2xf32, #tpu.memory_space<vmem>>, %arg13: memref<32x32xf32, #tpu.memory_space<vmem>>) attributes {dimension_semantics = [#tpu.dimension_semantics<arbitrary>], iteration_bounds = array<i64: 2>, scalar_prefetch = 0 : i64, scratch_operands = 1 : i64, tpu.core_type = #tpu.core_type<tc>, window_params = [{pipeline_mode = #tpu.pipeline_mode<synchronous>, transform_indices = @transform_0, window_bounds = array<i64: 32, 12>}, {pipeline_mode = #tpu.pipeline_mode<synchronous>, transform_indices = @transform_1, window_bounds = array<i64: 32, 32>}, {pipeline_mode = #tpu.pipeline_mode<synchronous>, transform_indices = @transform_2, window_bounds = array<i64: 2, 16>}, {pipeline_mode = #tpu.pipeline_mode<synchronous>, transform_indices = @transform_3, window_bounds = array<i64: 12, 32>}, {pipeline_mode = #tpu.pipeline_mode<synchronous>, transform_indices = @transform_4, window_bounds = array<i64: 4, 32>}, {pipeline_mode = #tpu.pipeline_mode<synchronous>, transform_indices = @transform_5, window_bounds = array<i64: 32, 2>}, {transform_indices = @transform_6, window_bounds = array<i64: 1, 8, 96>}, {transform_indices = @transform_7, window_bounds = array<i64: 1, 32, 96>}, {transform_indices = @transform_8, window_bounds = array<i64: 1, 32, 32>}, {transform_indices = @transform_9, window_bounds = array<i64: 1, 32, 64>}, {transform_indices = @transform_10, window_bounds = array<i64: 1, 64, 32>}, {pipeline_mode = #tpu.pipeline_mode<synchronous>, transform_indices = @transform_11, window_bounds = array<i64: 32, 2>}]} {
    %c0 = arith.constant 0 : index
    %c0_0 = arith.constant 0 : index
    %0 = vector.load %arg5[%c0, %c0_0] : memref<4x32xf32, #tpu.memory_space<vmem>>, vector<4x32xf32>
    %c0_i32 = arith.constant 0 : i32
    %1 = arith.cmpi eq, %arg0, %c0_i32 : i32
    %2 = arith.extui %1 : i1 to i32
    %c0_i32_1 = arith.constant 0 : i32
    %3 = arith.cmpi ne, %2, %c0_i32_1 : i32
    scf.if %3 {
      %c0_70 = arith.constant 0 : index
      %c0_71 = arith.constant 0 : index
      %221 = vector.load %arg1[%c0_70, %c0_71] : memref<32x12xf32, #tpu.memory_space<vmem>>, vector<32x12xf32>
      %c0_72 = arith.constant 0 : index
      %c0_73 = arith.constant 0 : index
      %222 = vector.load %arg4[%c0_72, %c0_73] : memref<12x32xf32, #tpu.memory_space<vmem>>, vector<12x32xf32>
      %cst_74 = arith.constant dense<0.000000e+00> : vector<32x32xf32>
      %223 = tpu.matmul %221, %222, %cst_74 {dimension_numbers = #tpu.dot_dimension_numbers<[1], [0], [0], [1], [0, 0, 1, 1], [], []>} : vector<32x12xf32>, vector<12x32xf32>, vector<32x32xf32> -> vector<32x32xf32>
      %224 = vector.extract_strided_slice %0 {offsets = [0, 0], sizes = [1, 32], strides = [1, 1]} : vector<4x32xf32> to vector<1x32xf32>
      %225 = vector.broadcast %224 : vector<1x32xf32> to vector<32x32xf32>
      %226 = arith.addf %223, %225 : vector<32x32xf32>
      %cst_75 = arith.constant 0.000000e+00 : f32
      %227 = vector.broadcast %cst_75 : f32 to vector<32x32xf32>
      %228 = arith.maximumf %226, %227 : vector<32x32xf32>
      %c0_76 = arith.constant 0 : index
      %c0_77 = arith.constant 0 : index
      %229 = vector.load %arg2[%c0_76, %c0_77] : memref<32x32xf32, #tpu.memory_space<vmem>>, vector<32x32xf32>
      %230 = arith.addf %228, %229 : vector<32x32xf32>
      %c0_78 = arith.constant 0 : index
      %c0_79 = arith.constant 0 : index
      %231 = vector.load %arg13[%c0_78, %c0_79] : memref<32x32xf32, #tpu.memory_space<vmem>>, vector<32x32xf32>
      tpu.vector_store %arg13[%c0_78, %c0_79], %230 {strides = array<i32>} : memref<32x32xf32, #tpu.memory_space<vmem>>, vector<32x32xf32>,
    } else {
    }
    %c0_2 = arith.constant 0 : index
    %c0_3 = arith.constant 0 : index
    %c0_4 = arith.constant 0 : index
    %4 = vector.load %arg7[%c0_2, %c0_3, %c0_4] : memref<1x8x96xf32, #tpu.memory_space<vmem>>, vector<1x8x96xf32>
    %5 = vector.shape_cast %4 : vector<1x8x96xf32> to vector<8x96xf32>
    %6 = vector.extract_strided_slice %5 {offsets = [0, 0], sizes = [1, 32], strides = [1, 1]} : vector<8x96xf32> to vector<1x32xf32>
    %7 = vector.extract_strided_slice %5 {offsets = [1, 0], sizes = [1, 32], strides = [1, 1]} : vector<8x96xf32> to vector<1x32xf32>
    %8 = vector.extract_strided_slice %5 {offsets = [2, 0], sizes = [1, 96], strides = [1, 1]} : vector<8x96xf32> to vector<1x96xf32>
    %9 = vector.extract_strided_slice %5 {offsets = [3, 0], sizes = [1, 32], strides = [1, 1]} : vector<8x96xf32> to vector<1x32xf32>
    %10 = vector.extract_strided_slice %5 {offsets = [4, 0], sizes = [1, 32], strides = [1, 1]} : vector<8x96xf32> to vector<1x32xf32>
    %11 = vector.extract_strided_slice %5 {offsets = [5, 0], sizes = [1, 32], strides = [1, 1]} : vector<8x96xf32> to vector<1x32xf32>
    %12 = vector.extract_strided_slice %5 {offsets = [6, 0], sizes = [1, 64], strides = [1, 1]} : vector<8x96xf32> to vector<1x64xf32>
    %13 = vector.extract_strided_slice %5 {offsets = [7, 0], sizes = [1, 32], strides = [1, 1]} : vector<8x96xf32> to vector<1x32xf32>
    %c0_5 = arith.constant 0 : index
    %c0_6 = arith.constant 0 : index
    %14 = vector.load %arg13[%c0_5, %c0_6] : memref<32x32xf32, #tpu.memory_space<vmem>>, vector<32x32xf32>
    %c0_7 = arith.constant 0 : index
    %c0_8 = arith.constant 0 : index
    %15 = vector.load %arg3[%c0_7, %c0_8] : memref<2x16xf32, #tpu.memory_space<vmem>>, vector<2x16xf32>
    %cst = arith.constant dense<0.000000e+00> : vector<32xf32>
    %16 = vector.multi_reduction <add>, %14, %cst [1] : vector<32x32xf32> to vector<32xf32>
    %17 = vector.shape_cast %16 : vector<32xf32> to vector<32x1xf32>
    %cst_9 = arith.constant 3.200000e+01 : f32
    %18 = vector.broadcast %cst_9 : f32 to vector<32x1xf32>
    %19 = arith.divf %17, %18 : vector<32x1xf32>
    %20 = vector.broadcast %19 : vector<32x1xf32> to vector<32x32xf32>
    %21 = arith.subf %14, %20 : vector<32x32xf32>
    %22 = arith.mulf %21, %21 : vector<32x32xf32>
    %cst_10 = arith.constant dense<0.000000e+00> : vector<32xf32>
    %23 = vector.multi_reduction <add>, %22, %cst_10 [1] : vector<32x32xf32> to vector<32xf32>
    %24 = vector.shape_cast %23 : vector<32xf32> to vector<32x1xf32>
    %cst_11 = arith.constant 3.200000e+01 : f32
    %25 = vector.broadcast %cst_11 : f32 to vector<32x1xf32>
    %26 = arith.divf %24, %25 : vector<32x1xf32>
    %27 = vector.broadcast %19 : vector<32x1xf32> to vector<32x32xf32>
    %28 = arith.subf %14, %27 : vector<32x32xf32>
    %cst_12 = arith.constant 9.99999997E-7 : f32
    %29 = vector.broadcast %cst_12 : f32 to vector<32x1xf32>
    %30 = arith.addf %26, %29 : vector<32x1xf32>
    %31 = math.rsqrt %30 : vector<32x1xf32>
    %32 = vector.broadcast %31 : vector<32x1xf32> to vector<32x32xf32>
    %33 = arith.mulf %28, %32 : vector<32x32xf32>
    %34 = vector.broadcast %6 : vector<1x32xf32> to vector<32x32xf32>
    %35 = arith.mulf %33, %34 : vector<32x32xf32>
    %36 = vector.broadcast %7 : vector<1x32xf32> to vector<32x32xf32>
    %37 = arith.addf %35, %36 : vector<32x32xf32>
    %c0_13 = arith.constant 0 : index
    %c0_14 = arith.constant 0 : index
    %c0_15 = arith.constant 0 : index
    %38 = vector.load %arg8[%c0_13, %c0_14, %c0_15] : memref<1x32x96xf32, #tpu.memory_space<vmem>>, vector<1x32x96xf32>
    %39 = vector.shape_cast %38 : vector<1x32x96xf32> to vector<32x96xf32>
    %cst_16 = arith.constant dense<0.000000e+00> : vector<32x96xf32>
    %40 = tpu.matmul %37, %39, %cst_16 {dimension_numbers = #tpu.dot_dimension_numbers<[1], [0], [0], [1], [0, 0, 1, 1], [], []>} : vector<32x32xf32>, vector<32x96xf32>, vector<32x96xf32> -> vector<32x96xf32>
    %41 = vector.broadcast %8 : vector<1x96xf32> to vector<32x96xf32>
    %42 = arith.addf %40, %41 : vector<32x96xf32>
    %43 = vector.extract_strided_slice %15 {offsets = [0, 0], sizes = [1, 16], strides = [1, 1]} : vector<2x16xf32> to vector<1x16xf32>
    %44 = vector.extract_strided_slice %42 {offsets = [0, 0], sizes = [16, 8], strides = [1, 1]} : vector<32x96xf32> to vector<16x8xf32>
    %45 = vector.extract_strided_slice %42 {offsets = [0, 32], sizes = [16, 8], strides = [1, 1]} : vector<32x96xf32> to vector<16x8xf32>
    %46 = vector.extract_strided_slice %42 {offsets = [0, 64], sizes = [16, 8], strides = [1, 1]} : vector<32x96xf32> to vector<16x8xf32>
    %cst_17 = arith.constant dense<0.000000e+00> : vector<16x16xf32>
    %47 = tpu.matmul %44, %45, %cst_17 {dimension_numbers = #tpu.dot_dimension_numbers<[1], [1], [0], [0], [0, 0, 1, 0], [], []>} : vector<16x8xf32>, vector<16x8xf32>, vector<16x16xf32> -> vector<16x16xf32>
    %48 = vector.broadcast %43 : vector<1x16xf32> to vector<16x16xf32>
    %49 = arith.addf %47, %48 : vector<16x16xf32>
    %cst_18 = arith.constant dense<0xFF800000> : vector<16xf32>
    %50 = vector.multi_reduction <maximumf>, %49, %cst_18 [1] : vector<16x16xf32> to vector<16xf32>
    %51 = vector.shape_cast %50 : vector<16xf32> to vector<16x1xf32>
    %52 = vector.broadcast %51 : vector<16x1xf32> to vector<16x16xf32>
    %53 = arith.subf %49, %52 : vector<16x16xf32>
    %54 = math.exp %53 : vector<16x16xf32>
    %cst_19 = arith.constant dense<0.000000e+00> : vector<16xf32>
    %55 = vector.multi_reduction <add>, %54, %cst_19 [1] : vector<16x16xf32> to vector<16xf32>
    %56 = vector.shape_cast %55 : vector<16xf32> to vector<16x1xf32>
    %57 = vector.broadcast %56 : vector<16x1xf32> to vector<16x16xf32>
    %58 = arith.divf %54, %57 : vector<16x16xf32>
    %cst_20 = arith.constant dense<0.000000e+00> : vector<16x8xf32>
    %59 = tpu.matmul %58, %46, %cst_20 {dimension_numbers = #tpu.dot_dimension_numbers<[1], [0], [0], [1], [0, 0, 1, 1], [], []>} : vector<16x16xf32>, vector<16x8xf32>, vector<16x8xf32> -> vector<16x8xf32>
    %60 = vector.extract_strided_slice %42 {offsets = [0, 8], sizes = [16, 8], strides = [1, 1]} : vector<32x96xf32> to vector<16x8xf32>
    %61 = vector.extract_strided_slice %42 {offsets = [0, 40], sizes = [16, 8], strides = [1, 1]} : vector<32x96xf32> to vector<16x8xf32>
    %62 = vector.extract_strided_slice %42 {offsets = [0, 72], sizes = [16, 8], strides = [1, 1]} : vector<32x96xf32> to vector<16x8xf32>
    %cst_21 = arith.constant dense<0.000000e+00> : vector<16x16xf32>
    %63 = tpu.matmul %60, %61, %cst_21 {dimension_numbers = #tpu.dot_dimension_numbers<[1], [1], [0], [0], [0, 0, 1, 0], [], []>} : vector<16x8xf32>, vector<16x8xf32>, vector<16x16xf32> -> vector<16x16xf32>
    %64 = vector.broadcast %43 : vector<1x16xf32> to vector<16x16xf32>
    %65 = arith.addf %63, %64 : vector<16x16xf32>
    %cst_22 = arith.constant dense<0xFF800000> : vector<16xf32>
    %66 = vector.multi_reduction <maximumf>, %65, %cst_22 [1] : vector<16x16xf32> to vector<16xf32>
    %67 = vector.shape_cast %66 : vector<16xf32> to vector<16x1xf32>
    %68 = vector.broadcast %67 : vector<16x1xf32> to vector<16x16xf32>
    %69 = arith.subf %65, %68 : vector<16x16xf32>
    %70 = math.exp %69 : vector<16x16xf32>
    %cst_23 = arith.constant dense<0.000000e+00> : vector<16xf32>
    %71 = vector.multi_reduction <add>, %70, %cst_23 [1] : vector<16x16xf32> to vector<16xf32>
    %72 = vector.shape_cast %71 : vector<16xf32> to vector<16x1xf32>
    %73 = vector.broadcast %72 : vector<16x1xf32> to vector<16x16xf32>
    %74 = arith.divf %70, %73 : vector<16x16xf32>
    %cst_24 = arith.constant dense<0.000000e+00> : vector<16x8xf32>
    %75 = tpu.matmul %74, %62, %cst_24 {dimension_numbers = #tpu.dot_dimension_numbers<[1], [0], [0], [1], [0, 0, 1, 1], [], []>} : vector<16x16xf32>, vector<16x8xf32>, vector<16x8xf32> -> vector<16x8xf32>
    %76 = vector.extract_strided_slice %42 {offsets = [0, 16], sizes = [16, 8], strides = [1, 1]} : vector<32x96xf32> to vector<16x8xf32>
    %77 = vector.extract_strided_slice %42 {offsets = [0, 48], sizes = [16, 8], strides = [1, 1]} : vector<32x96xf32> to vector<16x8xf32>
    %78 = vector.extract_strided_slice %42 {offsets = [0, 80], sizes = [16, 8], strides = [1, 1]} : vector<32x96xf32> to vector<16x8xf32>
    %cst_25 = arith.constant dense<0.000000e+00> : vector<16x16xf32>
    %79 = tpu.matmul %76, %77, %cst_25 {dimension_numbers = #tpu.dot_dimension_numbers<[1], [1], [0], [0], [0, 0, 1, 0], [], []>} : vector<16x8xf32>, vector<16x8xf32>, vector<16x16xf32> -> vector<16x16xf32>
    %80 = vector.broadcast %43 : vector<1x16xf32> to vector<16x16xf32>
    %81 = arith.addf %79, %80 : vector<16x16xf32>
    %cst_26 = arith.constant dense<0xFF800000> : vector<16xf32>
    %82 = vector.multi_reduction <maximumf>, %81, %cst_26 [1] : vector<16x16xf32> to vector<16xf32>
    %83 = vector.shape_cast %82 : vector<16xf32> to vector<16x1xf32>
    %84 = vector.broadcast %83 : vector<16x1xf32> to vector<16x16xf32>
    %85 = arith.subf %81, %84 : vector<16x16xf32>
    %86 = math.exp %85 : vector<16x16xf32>
    %cst_27 = arith.constant dense<0.000000e+00> : vector<16xf32>
    %87 = vector.multi_reduction <add>, %86, %cst_27 [1] : vector<16x16xf32> to vector<16xf32>
    %88 = vector.shape_cast %87 : vector<16xf32> to vector<16x1xf32>
    %89 = vector.broadcast %88 : vector<16x1xf32> to vector<16x16xf32>
    %90 = arith.divf %86, %89 : vector<16x16xf32>
    %cst_28 = arith.constant dense<0.000000e+00> : vector<16x8xf32>
    %91 = tpu.matmul %90, %78, %cst_28 {dimension_numbers = #tpu.dot_dimension_numbers<[1], [0], [0], [1], [0, 0, 1, 1], [], []>} : vector<16x16xf32>, vector<16x8xf32>, vector<16x8xf32> -> vector<16x8xf32>
    %92 = vector.extract_strided_slice %42 {offsets = [0, 24], sizes = [16, 8], strides = [1, 1]} : vector<32x96xf32> to vector<16x8xf32>
    %93 = vector.extract_strided_slice %42 {offsets = [0, 56], sizes = [16, 8], strides = [1, 1]} : vector<32x96xf32> to vector<16x8xf32>
    %94 = vector.extract_strided_slice %42 {offsets = [0, 88], sizes = [16, 8], strides = [1, 1]} : vector<32x96xf32> to vector<16x8xf32>
    %cst_29 = arith.constant dense<0.000000e+00> : vector<16x16xf32>
    %95 = tpu.matmul %92, %93, %cst_29 {dimension_numbers = #tpu.dot_dimension_numbers<[1], [1], [0], [0], [0, 0, 1, 0], [], []>} : vector<16x8xf32>, vector<16x8xf32>, vector<16x16xf32> -> vector<16x16xf32>
    %96 = vector.broadcast %43 : vector<1x16xf32> to vector<16x16xf32>
    %97 = arith.addf %95, %96 : vector<16x16xf32>
    %cst_30 = arith.constant dense<0xFF800000> : vector<16xf32>
    %98 = vector.multi_reduction <maximumf>, %97, %cst_30 [1] : vector<16x16xf32> to vector<16xf32>
    %99 = vector.shape_cast %98 : vector<16xf32> to vector<16x1xf32>
    %100 = vector.broadcast %99 : vector<16x1xf32> to vector<16x16xf32>
    %101 = arith.subf %97, %100 : vector<16x16xf32>
    %102 = math.exp %101 : vector<16x16xf32>
    %cst_31 = arith.constant dense<0.000000e+00> : vector<16xf32>
    %103 = vector.multi_reduction <add>, %102, %cst_31 [1] : vector<16x16xf32> to vector<16xf32>
    %104 = vector.shape_cast %103 : vector<16xf32> to vector<16x1xf32>
    %105 = vector.broadcast %104 : vector<16x1xf32> to vector<16x16xf32>
    %106 = arith.divf %102, %105 : vector<16x16xf32>
    %cst_32 = arith.constant dense<0.000000e+00> : vector<16x8xf32>
    %107 = tpu.matmul %106, %94, %cst_32 {dimension_numbers = #tpu.dot_dimension_numbers<[1], [0], [0], [1], [0, 0, 1, 1], [], []>} : vector<16x16xf32>, vector<16x8xf32>, vector<16x8xf32> -> vector<16x8xf32>
    %108 = tpu.concatenate %59, %75, %91, %107 in 1 : vector<16x8xf32>, vector<16x8xf32>, vector<16x8xf32>, vector<16x8xf32> -> vector<16x32xf32>
    %109 = vector.extract_strided_slice %15 {offsets = [1, 0], sizes = [1, 16], strides = [1, 1]} : vector<2x16xf32> to vector<1x16xf32>
    %110 = vector.extract_strided_slice %42 {offsets = [16, 0], sizes = [16, 8], strides = [1, 1]} : vector<32x96xf32> to vector<16x8xf32>
    %111 = vector.extract_strided_slice %42 {offsets = [16, 32], sizes = [16, 8], strides = [1, 1]} : vector<32x96xf32> to vector<16x8xf32>
    %112 = vector.extract_strided_slice %42 {offsets = [16, 64], sizes = [16, 8], strides = [1, 1]} : vector<32x96xf32> to vector<16x8xf32>
    %cst_33 = arith.constant dense<0.000000e+00> : vector<16x16xf32>
    %113 = tpu.matmul %110, %111, %cst_33 {dimension_numbers = #tpu.dot_dimension_numbers<[1], [1], [0], [0], [0, 0, 1, 0], [], []>} : vector<16x8xf32>, vector<16x8xf32>, vector<16x16xf32> -> vector<16x16xf32>
    %114 = vector.broadcast %109 : vector<1x16xf32> to vector<16x16xf32>
    %115 = arith.addf %113, %114 : vector<16x16xf32>
    %cst_34 = arith.constant dense<0xFF800000> : vector<16xf32>
    %116 = vector.multi_reduction <maximumf>, %115, %cst_34 [1] : vector<16x16xf32> to vector<16xf32>
    %117 = vector.shape_cast %116 : vector<16xf32> to vector<16x1xf32>
    %118 = vector.broadcast %117 : vector<16x1xf32> to vector<16x16xf32>
    %119 = arith.subf %115, %118 : vector<16x16xf32>
    %120 = math.exp %119 : vector<16x16xf32>
    %cst_35 = arith.constant dense<0.000000e+00> : vector<16xf32>
    %121 = vector.multi_reduction <add>, %120, %cst_35 [1] : vector<16x16xf32> to vector<16xf32>
    %122 = vector.shape_cast %121 : vector<16xf32> to vector<16x1xf32>
    %123 = vector.broadcast %122 : vector<16x1xf32> to vector<16x16xf32>
    %124 = arith.divf %120, %123 : vector<16x16xf32>
    %cst_36 = arith.constant dense<0.000000e+00> : vector<16x8xf32>
    %125 = tpu.matmul %124, %112, %cst_36 {dimension_numbers = #tpu.dot_dimension_numbers<[1], [0], [0], [1], [0, 0, 1, 1], [], []>} : vector<16x16xf32>, vector<16x8xf32>, vector<16x8xf32> -> vector<16x8xf32>
    %126 = vector.extract_strided_slice %42 {offsets = [16, 8], sizes = [16, 8], strides = [1, 1]} : vector<32x96xf32> to vector<16x8xf32>
    %127 = vector.extract_strided_slice %42 {offsets = [16, 40], sizes = [16, 8], strides = [1, 1]} : vector<32x96xf32> to vector<16x8xf32>
    %128 = vector.extract_strided_slice %42 {offsets = [16, 72], sizes = [16, 8], strides = [1, 1]} : vector<32x96xf32> to vector<16x8xf32>
    %cst_37 = arith.constant dense<0.000000e+00> : vector<16x16xf32>
    %129 = tpu.matmul %126, %127, %cst_37 {dimension_numbers = #tpu.dot_dimension_numbers<[1], [1], [0], [0], [0, 0, 1, 0], [], []>} : vector<16x8xf32>, vector<16x8xf32>, vector<16x16xf32> -> vector<16x16xf32>
    %130 = vector.broadcast %109 : vector<1x16xf32> to vector<16x16xf32>
    %131 = arith.addf %129, %130 : vector<16x16xf32>
    %cst_38 = arith.constant dense<0xFF800000> : vector<16xf32>
    %132 = vector.multi_reduction <maximumf>, %131, %cst_38 [1] : vector<16x16xf32> to vector<16xf32>
    %133 = vector.shape_cast %132 : vector<16xf32> to vector<16x1xf32>
    %134 = vector.broadcast %133 : vector<16x1xf32> to vector<16x16xf32>
    %135 = arith.subf %131, %134 : vector<16x16xf32>
    %136 = math.exp %135 : vector<16x16xf32>
    %cst_39 = arith.constant dense<0.000000e+00> : vector<16xf32>
    %137 = vector.multi_reduction <add>, %136, %cst_39 [1] : vector<16x16xf32> to vector<16xf32>
    %138 = vector.shape_cast %137 : vector<16xf32> to vector<16x1xf32>
    %139 = vector.broadcast %138 : vector<16x1xf32> to vector<16x16xf32>
    %140 = arith.divf %136, %139 : vector<16x16xf32>
    %cst_40 = arith.constant dense<0.000000e+00> : vector<16x8xf32>
    %141 = tpu.matmul %140, %128, %cst_40 {dimension_numbers = #tpu.dot_dimension_numbers<[1], [0], [0], [1], [0, 0, 1, 1], [], []>} : vector<16x16xf32>, vector<16x8xf32>, vector<16x8xf32> -> vector<16x8xf32>
    %142 = vector.extract_strided_slice %42 {offsets = [16, 16], sizes = [16, 8], strides = [1, 1]} : vector<32x96xf32> to vector<16x8xf32>
    %143 = vector.extract_strided_slice %42 {offsets = [16, 48], sizes = [16, 8], strides = [1, 1]} : vector<32x96xf32> to vector<16x8xf32>
    %144 = vector.extract_strided_slice %42 {offsets = [16, 80], sizes = [16, 8], strides = [1, 1]} : vector<32x96xf32> to vector<16x8xf32>
    %cst_41 = arith.constant dense<0.000000e+00> : vector<16x16xf32>
    %145 = tpu.matmul %142, %143, %cst_41 {dimension_numbers = #tpu.dot_dimension_numbers<[1], [1], [0], [0], [0, 0, 1, 0], [], []>} : vector<16x8xf32>, vector<16x8xf32>, vector<16x16xf32> -> vector<16x16xf32>
    %146 = vector.broadcast %109 : vector<1x16xf32> to vector<16x16xf32>
    %147 = arith.addf %145, %146 : vector<16x16xf32>
    %cst_42 = arith.constant dense<0xFF800000> : vector<16xf32>
    %148 = vector.multi_reduction <maximumf>, %147, %cst_42 [1] : vector<16x16xf32> to vector<16xf32>
    %149 = vector.shape_cast %148 : vector<16xf32> to vector<16x1xf32>
    %150 = vector.broadcast %149 : vector<16x1xf32> to vector<16x16xf32>
    %151 = arith.subf %147, %150 : vector<16x16xf32>
    %152 = math.exp %151 : vector<16x16xf32>
    %cst_43 = arith.constant dense<0.000000e+00> : vector<16xf32>
    %153 = vector.multi_reduction <add>, %152, %cst_43 [1] : vector<16x16xf32> to vector<16xf32>
    %154 = vector.shape_cast %153 : vector<16xf32> to vector<16x1xf32>
    %155 = vector.broadcast %154 : vector<16x1xf32> to vector<16x16xf32>
    %156 = arith.divf %152, %155 : vector<16x16xf32>
    %cst_44 = arith.constant dense<0.000000e+00> : vector<16x8xf32>
    %157 = tpu.matmul %156, %144, %cst_44 {dimension_numbers = #tpu.dot_dimension_numbers<[1], [0], [0], [1], [0, 0, 1, 1], [], []>} : vector<16x16xf32>, vector<16x8xf32>, vector<16x8xf32> -> vector<16x8xf32>
    %158 = vector.extract_strided_slice %42 {offsets = [16, 24], sizes = [16, 8], strides = [1, 1]} : vector<32x96xf32> to vector<16x8xf32>
    %159 = vector.extract_strided_slice %42 {offsets = [16, 56], sizes = [16, 8], strides = [1, 1]} : vector<32x96xf32> to vector<16x8xf32>
    %160 = vector.extract_strided_slice %42 {offsets = [16, 88], sizes = [16, 8], strides = [1, 1]} : vector<32x96xf32> to vector<16x8xf32>
    %cst_45 = arith.constant dense<0.000000e+00> : vector<16x16xf32>
    %161 = tpu.matmul %158, %159, %cst_45 {dimension_numbers = #tpu.dot_dimension_numbers<[1], [1], [0], [0], [0, 0, 1, 0], [], []>} : vector<16x8xf32>, vector<16x8xf32>, vector<16x16xf32> -> vector<16x16xf32>
    %162 = vector.broadcast %109 : vector<1x16xf32> to vector<16x16xf32>
    %163 = arith.addf %161, %162 : vector<16x16xf32>
    %cst_46 = arith.constant dense<0xFF800000> : vector<16xf32>
    %164 = vector.multi_reduction <maximumf>, %163, %cst_46 [1] : vector<16x16xf32> to vector<16xf32>
    %165 = vector.shape_cast %164 : vector<16xf32> to vector<16x1xf32>
    %166 = vector.broadcast %165 : vector<16x1xf32> to vector<16x16xf32>
    %167 = arith.subf %163, %166 : vector<16x16xf32>
    %168 = math.exp %167 : vector<16x16xf32>
    %cst_47 = arith.constant dense<0.000000e+00> : vector<16xf32>
    %169 = vector.multi_reduction <add>, %168, %cst_47 [1] : vector<16x16xf32> to vector<16xf32>
    %170 = vector.shape_cast %169 : vector<16xf32> to vector<16x1xf32>
    %171 = vector.broadcast %170 : vector<16x1xf32> to vector<16x16xf32>
    %172 = arith.divf %168, %171 : vector<16x16xf32>
    %cst_48 = arith.constant dense<0.000000e+00> : vector<16x8xf32>
    %173 = tpu.matmul %172, %160, %cst_48 {dimension_numbers = #tpu.dot_dimension_numbers<[1], [0], [0], [1], [0, 0, 1, 1], [], []>} : vector<16x16xf32>, vector<16x8xf32>, vector<16x8xf32> -> vector<16x8xf32>
    %174 = tpu.concatenate %125, %141, %157, %173 in 1 : vector<16x8xf32>, vector<16x8xf32>, vector<16x8xf32>, vector<16x8xf32> -> vector<16x32xf32>
    %175 = tpu.concatenate %108, %174 in 0 : vector<16x32xf32>, vector<16x32xf32> -> vector<32x32xf32>
    %c0_49 = arith.constant 0 : index
    %c0_50 = arith.constant 0 : index
    %c0_51 = arith.constant 0 : index
    %176 = vector.load %arg9[%c0_49, %c0_50, %c0_51] : memref<1x32x32xf32, #tpu.memory_space<vmem>>, vector<1x32x32xf32>
    %177 = vector.shape_cast %176 : vector<1x32x32xf32> to vector<32x32xf32>
    %cst_52 = arith.constant dense<0.000000e+00> : vector<32x32xf32>
    %178 = tpu.matmul %175, %177, %cst_52 {dimension_numbers = #tpu.dot_dimension_numbers<[1], [0], [0], [1], [0, 0, 1, 1], [], []>} : vector<32x32xf32>, vector<32x32xf32>, vector<32x32xf32> -> vector<32x32xf32>
    %179 = vector.broadcast %9 : vector<1x32xf32> to vector<32x32xf32>
    %180 = arith.addf %178, %179 : vector<32x32xf32>
    %181 = arith.addf %180, %14 : vector<32x32xf32>
    %cst_53 = arith.constant dense<0.000000e+00> : vector<32xf32>
    %182 = vector.multi_reduction <add>, %181, %cst_53 [1] : vector<32x32xf32> to vector<32xf32>
    %183 = vector.shape_cast %182 : vector<32xf32> to vector<32x1xf32>
    %cst_54 = arith.constant 3.200000e+01 : f32
    %184 = vector.broadcast %cst_54 : f32 to vector<32x1xf32>
    %185 = arith.divf %183, %184 : vector<32x1xf32>
    %186 = vector.broadcast %185 : vector<32x1xf32> to vector<32x32xf32>
    %187 = arith.subf %181, %186 : vector<32x32xf32>
    %188 = arith.mulf %187, %187 : vector<32x32xf32>
    %cst_55 = arith.constant dense<0.000000e+00> : vector<32xf32>
    %189 = vector.multi_reduction <add>, %188, %cst_55 [1] : vector<32x32xf32> to vector<32xf32>
    %190 = vector.shape_cast %189 : vector<32xf32> to vector<32x1xf32>
    %cst_56 = arith.constant 3.200000e+01 : f32
    %191 = vector.broadcast %cst_56 : f32 to vector<32x1xf32>
    %192 = arith.divf %190, %191 : vector<32x1xf32>
    %193 = vector.broadcast %185 : vector<32x1xf32> to vector<32x32xf32>
    %194 = arith.subf %181, %193 : vector<32x32xf32>
    %cst_57 = arith.constant 9.99999997E-7 : f32
    %195 = vector.broadcast %cst_57 : f32 to vector<32x1xf32>
    %196 = arith.addf %192, %195 : vector<32x1xf32>
    %197 = math.rsqrt %196 : vector<32x1xf32>
    %198 = vector.broadcast %197 : vector<32x1xf32> to vector<32x32xf32>
    %199 = arith.mulf %194, %198 : vector<32x32xf32>
    %200 = vector.broadcast %10 : vector<1x32xf32> to vector<32x32xf32>
    %201 = arith.mulf %199, %200 : vector<32x32xf32>
    %202 = vector.broadcast %11 : vector<1x32xf32> to vector<32x32xf32>
    %203 = arith.addf %201, %202 : vector<32x32xf32>
    %c0_58 = arith.constant 0 : index
    %c0_59 = arith.constant 0 : index
    %c0_60 = arith.constant 0 : index
    %204 = vector.load %arg10[%c0_58, %c0_59, %c0_60] : memref<1x32x64xf32, #tpu.memory_space<vmem>>, vector<1x32x64xf32>
    %205 = vector.shape_cast %204 : vector<1x32x64xf32> to vector<32x64xf32>
    %cst_61 = arith.constant dense<0.000000e+00> : vector<32x64xf32>
    %206 = tpu.matmul %203, %205, %cst_61 {dimension_numbers = #tpu.dot_dimension_numbers<[1], [0], [0], [1], [0, 0, 1, 1], [], []>} : vector<32x32xf32>, vector<32x64xf32>, vector<32x64xf32> -> vector<32x64xf32>
    %207 = vector.broadcast %12 : vector<1x64xf32> to vector<32x64xf32>
    %208 = arith.addf %206, %207 : vector<32x64xf32>
    %cst_62 = arith.constant 0.000000e+00 : f32
    %209 = vector.broadcast %cst_62 : f32 to vector<32x64xf32>
    %210 = arith.maximumf %208, %209 : vector<32x64xf32>
    %c0_63 = arith.constant 0 : index
    %c0_64 = arith.constant 0 : index
    %c0_65 = arith.constant 0 : index
    %211 = vector.load %arg11[%c0_63, %c0_64, %c0_65] : memref<1x64x32xf32, #tpu.memory_space<vmem>>, vector<1x64x32xf32>
    %212 = vector.shape_cast %211 : vector<1x64x32xf32> to vector<64x32xf32>
    %cst_66 = arith.constant dense<0.000000e+00> : vector<32x32xf32>
    %213 = tpu.matmul %210, %212, %cst_66 {dimension_numbers = #tpu.dot_dimension_numbers<[1], [0], [0], [1], [0, 0, 1, 1], [], []>} : vector<32x64xf32>, vector<64x32xf32>, vector<32x32xf32> -> vector<32x32xf32>
    %214 = vector.broadcast %13 : vector<1x32xf32> to vector<32x32xf32>
    %215 = arith.addf %213, %214 : vector<32x32xf32>
    %216 = arith.addf %215, %181 : vector<32x32xf32>
    %c0_67 = arith.constant 0 : index
    %c0_68 = arith.constant 0 : index
    %217 = vector.load %arg13[%c0_67, %c0_68] : memref<32x32xf32, #tpu.memory_space<vmem>>, vector<32x32xf32>
    tpu.vector_store %arg13[%c0_67, %c0_68], %216 {strides = array<i32>} : memref<32x32xf32, #tpu.memory_space<vmem>>, vector<32x32xf32>,
    %c1_i32 = arith.constant 1 : i32
    %218 = arith.cmpi eq, %arg0, %c1_i32 : i32
    %219 = arith.extui %218 : i1 to i32
    %c0_i32_69 = arith.constant 0 : i32
    %220 = arith.cmpi ne, %219, %c0_i32_69 : i32
    scf.if %220 {
      %221 = vector.extract_strided_slice %0 {offsets = [1, 0], sizes = [1, 32], strides = [1, 1]} : vector<4x32xf32> to vector<1x32xf32>
      %222 = vector.extract_strided_slice %0 {offsets = [2, 0], sizes = [1, 32], strides = [1, 1]} : vector<4x32xf32> to vector<1x32xf32>
      %cst_70 = arith.constant dense<0.000000e+00> : vector<32xf32>
      %223 = vector.multi_reduction <add>, %216, %cst_70 [1] : vector<32x32xf32> to vector<32xf32>
      %224 = vector.shape_cast %223 : vector<32xf32> to vector<32x1xf32>
      %cst_71 = arith.constant 3.200000e+01 : f32
      %225 = vector.broadcast %cst_71 : f32 to vector<32x1xf32>
      %226 = arith.divf %224, %225 : vector<32x1xf32>
      %227 = vector.broadcast %226 : vector<32x1xf32> to vector<32x32xf32>
      %228 = arith.subf %216, %227 : vector<32x32xf32>
      %229 = arith.mulf %228, %228 : vector<32x32xf32>
      %cst_72 = arith.constant dense<0.000000e+00> : vector<32xf32>
      %230 = vector.multi_reduction <add>, %229, %cst_72 [1] : vector<32x32xf32> to vector<32xf32>
      %231 = vector.shape_cast %230 : vector<32xf32> to vector<32x1xf32>
      %cst_73 = arith.constant 3.200000e+01 : f32
      %232 = vector.broadcast %cst_73 : f32 to vector<32x1xf32>
      %233 = arith.divf %231, %232 : vector<32x1xf32>
      %234 = vector.broadcast %226 : vector<32x1xf32> to vector<32x32xf32>
      %235 = arith.subf %216, %234 : vector<32x32xf32>
      %cst_74 = arith.constant 9.99999997E-7 : f32
      %236 = vector.broadcast %cst_74 : f32 to vector<32x1xf32>
      %237 = arith.addf %233, %236 : vector<32x1xf32>
      %238 = math.rsqrt %237 : vector<32x1xf32>
      %239 = vector.broadcast %238 : vector<32x1xf32> to vector<32x32xf32>
      %240 = arith.mulf %235, %239 : vector<32x32xf32>
      %241 = vector.broadcast %221 : vector<1x32xf32> to vector<32x32xf32>
      %242 = arith.mulf %240, %241 : vector<32x32xf32>
      %243 = vector.broadcast %222 : vector<1x32xf32> to vector<32x32xf32>
      %244 = arith.addf %242, %243 : vector<32x32xf32>
      %c0_75 = arith.constant 0 : index
      %c0_76 = arith.constant 0 : index
      %245 = vector.load %arg6[%c0_75, %c0_76] : memref<32x2xf32, #tpu.memory_space<vmem>>, vector<32x2xf32>
      %cst_77 = arith.constant dense<0.000000e+00> : vector<32x2xf32>
      %246 = tpu.matmul %244, %245, %cst_77 {dimension_numbers = #tpu.dot_dimension_numbers<[1], [0], [0], [1], [0, 0, 1, 1], [], []>} : vector<32x32xf32>, vector<32x2xf32>, vector<32x2xf32> -> vector<32x2xf32>
      %247 = vector.extract_strided_slice %0 {offsets = [3, 0], sizes = [1, 2], strides = [1, 1]} : vector<4x32xf32> to vector<1x2xf32>
      %248 = vector.broadcast %247 : vector<1x2xf32> to vector<32x2xf32>
      %249 = arith.addf %246, %248 : vector<32x2xf32>
      %cst_78 = arith.constant dense<0xFF800000> : vector<32xf32>
      %250 = vector.multi_reduction <maximumf>, %249, %cst_78 [1] : vector<32x2xf32> to vector<32xf32>
      %251 = vector.shape_cast %250 : vector<32xf32> to vector<32x1xf32>
      %252 = vector.broadcast %251 : vector<32x1xf32> to vector<32x2xf32>
      %253 = arith.subf %249, %252 : vector<32x2xf32>
      %254 = math.exp %253 : vector<32x2xf32>
      %cst_79 = arith.constant dense<0.000000e+00> : vector<32xf32>
      %255 = vector.multi_reduction <add>, %254, %cst_79 [1] : vector<32x2xf32> to vector<32xf32>
      %256 = vector.shape_cast %255 : vector<32xf32> to vector<32x1xf32>
      %257 = math.log %256 : vector<32x1xf32>
      %258 = arith.addf %257, %251 : vector<32x1xf32>
      %259 = vector.broadcast %258 : vector<32x1xf32> to vector<32x2xf32>
      %260 = arith.subf %249, %259 : vector<32x2xf32>
      %c0_80 = arith.constant 0 : index
      %c0_81 = arith.constant 0 : index
      %261 = vector.load %arg12[%c0_80, %c0_81] : memref<32x2xf32, #tpu.memory_space<vmem>>, vector<32x2xf32>
      tpu.vector_store %arg12[%c0_80, %c0_81], %260 {strides = array<i32>} : memref<32x2xf32, #tpu.memory_space<vmem>>, vector<32x2xf32>,
    } else {
    }
    return
  }
  func.func @transform_0(%arg0: i32) -> (i32, i32) {
    %c0_i32 = arith.constant 0 : i32
    %c0_i32_0 = arith.constant 0 : i32
    %c0_i32_1 = arith.constant 0 : i32
    return %c0_i32, %c0_i32_0 : i32, i32
  }
  func.func @transform_1(%arg0: i32) -> (i32, i32) {
    %c0_i32 = arith.constant 0 : i32
    %c0_i32_0 = arith.constant 0 : i32
    %c0_i32_1 = arith.constant 0 : i32
    return %c0_i32, %c0_i32_0 : i32, i32
  }
  func.func @transform_2(%arg0: i32) -> (i32, i32) {
    %c0_i32 = arith.constant 0 : i32
    %c0_i32_0 = arith.constant 0 : i32
    %c0_i32_1 = arith.constant 0 : i32
    return %c0_i32, %c0_i32_0 : i32, i32
  }
  func.func @transform_3(%arg0: i32) -> (i32, i32) {
    %c0_i32 = arith.constant 0 : i32
    %c0_i32_0 = arith.constant 0 : i32
    %c0_i32_1 = arith.constant 0 : i32
    return %c0_i32, %c0_i32_0 : i32, i32
  }
  func.func @transform_4(%arg0: i32) -> (i32, i32) {
    %c0_i32 = arith.constant 0 : i32
    %c0_i32_0 = arith.constant 0 : i32
    %c0_i32_1 = arith.constant 0 : i32
    return %c0_i32, %c0_i32_0 : i32, i32
  }
  func.func @transform_5(%arg0: i32) -> (i32, i32) {
    %c0_i32 = arith.constant 0 : i32
    %c0_i32_0 = arith.constant 0 : i32
    %c0_i32_1 = arith.constant 0 : i32
    return %c0_i32, %c0_i32_0 : i32, i32
  }
  func.func @transform_6(%arg0: i32) -> (i32, i32, i32) {
    %c0_i32 = arith.constant 0 : i32
    %c0_i32_0 = arith.constant 0 : i32
    %c0_i32_1 = arith.constant 0 : i32
    return %arg0, %c0_i32, %c0_i32_0 : i32, i32, i32
  }
  func.func @transform_7(%arg0: i32) -> (i32, i32, i32) {
    %c0_i32 = arith.constant 0 : i32
    %c0_i32_0 = arith.constant 0 : i32
    %c0_i32_1 = arith.constant 0 : i32
    return %arg0, %c0_i32, %c0_i32_0 : i32, i32, i32
  }
  func.func @transform_8(%arg0: i32) -> (i32, i32, i32) {
    %c0_i32 = arith.constant 0 : i32
    %c0_i32_0 = arith.constant 0 : i32
    %c0_i32_1 = arith.constant 0 : i32
    return %arg0, %c0_i32, %c0_i32_0 : i32, i32, i32
  }
  func.func @transform_9(%arg0: i32) -> (i32, i32, i32) {
    %c0_i32 = arith.constant 0 : i32
    %c0_i32_0 = arith.constant 0 : i32
    %c0_i32_1 = arith.constant 0 : i32
    return %arg0, %c0_i32, %c0_i32_0 : i32, i32, i32
  }
  func.func @transform_10(%arg0: i32) -> (i32, i32, i32) {
    %c0_i32 = arith.constant 0 : i32
    %c0_i32_0 = arith.constant 0 : i32
    %c0_i32_1 = arith.constant 0 : i32
    return %arg0, %c0_i32, %c0_i32_0 : i32, i32, i32
  }
  func.func @transform_11(%arg0: i32) -> (i32, i32) {
    %c0_i32 = arith.constant 0 : i32
    %c0_i32_0 = arith.constant 0 : i32
    %c0_i32_1 = arith.constant 0 : i32
    return %c0_i32, %c0_i32_0 : i32, i32
  }
}

</mosaic_0001>

<bundles_post_ra>
// kernel: forward.1
= control target key start
LH: loop header
LB: loop body
LE: loop exit
PB: predicated region body
PF: predicated region fallthrough
CT: control target
= control target key end

     0   :  { %s3988_s17 = smov 0   ;;  %s4517_s0 = inlined_call_operand.vmem [shape: f32[32,12], index: 0, kind: input, shape index: {}]   ;;  %s4518_s1 = inlined_call_operand.vmem [shape: f32[32,32], index: 1, kind: input, shape index: {}]   ;;  %s4519_s2 = inlined_call_operand.vmem [shape: f32[2,16], index: 2, kind: input, shape index: {}]   ;;  %s4520_s3 = inlined_call_operand.vmem [shape: f32[12,32], index: 3, kind: input, shape index: {}]   ;;  %s4521_s4 = inlined_call_operand.vmem [shape: f32[4,32], index: 4, kind: input, shape index: {}]   ;;  %s4522_s5 = inlined_call_operand.vmem [shape: f32[32,2], index: 5, kind: input, shape index: {}]   ;;  %s4523_s6 = inlined_call_operand.vmem [shape: f32[2,8,96], index: 6, kind: input, shape index: {}]   ;;  %s4524_s7 = inlined_call_operand.vmem [shape: f32[2,32,96], index: 7, kind: input, shape index: {}]   ;;  %s4525_s8 = inlined_call_operand.vmem [shape: f32[2,32,32], index: 8, kind: input, shape index: {}]   ;;  %s4526_s9 = inlined_call_operand.vmem [shape: f32[2,32,64], index: 9, kind: input, shape index: {}]   ;;  %s4527_s10 = inlined_call_operand.vmem [shape: f32[2,64,32], index: 10, kind: input, shape index: {}]   ;;  %s4528_s11 = inlined_call_operand.vmem [shape: f32[32,2], index: 11, kind: output, shape index: {}]  }
   0x1 LB: > { %s3994_s18 = sadd.s32 4294967295, %s3911_s17   ;;  %p3148_p0 = scmp.ge.s32.totalorder %s3911_s17, 1  ;;  %s3911_s17 = sphi %s3988_s17, %s21_s17  }
   0x2   : > { %p371_p1 = scmp.lt.s32.totalorder %s3911_s17, 3 }
   0x4   : > { %p372_p2 = pnand %p3148_p0, %p371_p1 }
   0x5   : > { %p425_p3 = scmp.lt.s32.totalorder (!%p372_p2), %s3994_s18, 1  ;;  %v4002_v0 = vld [vmem:[%s4521_s4] sm:$0xf] (!%p372_p2)  ;;  %p3158_p4 = scmp.ne.s32.totalorder (!%p372_p2), %s3994_s18, 0 }
   0x6   : > { %375 = sbr.rel (%p372_p2) target bundleno = 6353 (0x18d1), region = 64 }
   0xd   : > { %s426_s21 = scalar_select %p425_p3, %s3994_s18, 1 }
   0xe   : > { %453 = sbr.rel (%p3158_p4) target bundleno = 241 (0xf1), region = 68  ;;  %v458_v1 = vld [vmem:[%s4520_s3] sm:$0xff] (!%p3158_p4)  ;;  %v459_v2 = vld [vmem:[%s4520_s3 + $0x8] sm:$0xf] (!%p3158_p4)  ;;  %vm477_vm0 = vcmask (!%p3158_p4), 1043456   ;;  %vm3913_vm1 = vmmov (!%p3158_p4), 1   ;;  %v460_v8 = vlaneseq (!%p3158_p4) }
   0xf   : > { %s3149_s22 = sshll.u32 %s426_s21, 3  ;;  %s3235_s23 = sshll.u32 %s426_s21, 5  ;;  %v454_v3 = vld [vmem:[%s4517_s0] sm:$0xff] (!%p3158_p4)  ;;  %v3553_v4 = vpack.c.bf16 (!%p3158_p4), %v459_v2, %v458_v1  ;;  %vm3554_vm2 = vmpackc.low (!%p3158_p4), %vm477_vm0, %vm3913_vm1  ;;  %vm464_vm3 = vcmask (!%p3158_p4), 97280   ;;  %v456_v5 = vld [vmem:[%s4517_s0 + $0x10] sm:$0xff] (!%p3158_p4)  ;;  %vm578_vm4 = vcmask (!%p3158_p4), 261120  }
  0x10   : > { %s4008_s26 = scalar_lea.vmem %s4523_s6, %s3149_s22  ;;  %s4013_s29 = scalar_lea.vmem %s4524_s7, %s3235_s23  ;;  %3357 = vmatprep.mubr.msk.f32.mxu0 (!%p3158_p4), %vm464_vm3, %v454_v3  ;;  %3360 = vmatprep.mubr.msk.f32.mxu1 (!%p3158_p4), %vm464_vm3, %v456_v5  ;;  %v455_v6 = vld [vmem:[%s4517_s0 + $0x8] sm:$0xff] (!%p3158_p4)  ;;  %v457_v7 = vld [vmem:[%s4517_s0 + $0x18] sm:$0xff] (!%p3158_p4)  ;;  %v461_v9 = vshrl.u32 (!%p3158_p4), %v460_v8, 7  ;;  %v570_v24 = vld [vmem:[%s4518_s1] sm:$0xff] (!%p3158_p4) }
  0x11   : > { %s4018_s13 = scalar_lea.vmem %s4525_s8, %s3235_s23  ;;  %s4023_s16 = scalar_lea.vmem %s4526_s9, %s3235_s23  ;;  %3555 = vmatprep.subr.msk.bf16.mxu0 (!%p3158_p4), %vm3554_vm2, %v3553_v4  ;;  %3687 = vmatprep.subr.msk.bf16.mxu1 (!%p3158_p4), %vm3554_vm2, %v3553_v4  ;;  %v571_v18 = vld [vmem:[%s4518_s1 + $0x8] sm:$0xff] (!%p3158_p4)  ;;  %v573_v19 = vld [vmem:[%s4518_s1 + $0x18] sm:$0xff] (!%p3158_p4)  ;;  %v572_v25 = vld [vmem:[%s4518_s1 + $0x10] sm:$0xff] (!%p3158_p4) }
  0x12   : > { %s3238_s19 = sshll.u32 %s426_s21, 6  ;;  %3558 = vmatpush3.bf16.msk.msra.mxu0 (!%p3158_p4), %vm3554_vm2, %v3553_v4  ;;  %3688 = vmatpush3.bf16.msk.msra.mxu1 (!%p3158_p4), %vm3554_vm2, %v3553_v4  ;;  %v462_v10 = vsub.s32 (!%p3158_p4), 0, %v461_v9 }
  0x13   : > { %s4028_s22 = scalar_lea.vmem %s4527_s10, %s3238_s19 }
  0x14   : > { %v463_v11 = vrot.slane (!%p3158_p4), %v4002_v0, %v462_v10 }
  0x15   : > { %3358 = vmatmul.mubr.msk.f32.vlgmr.msra.gmra.mrb[0].mxu0 %vm464_vm3, %v455_v6  ;;  %3361 = vmatmul.mubr.msk.f32.vlgmr.msra.gmra.mrb[0].mxu1 %vm464_vm3, %v457_v7 }
  0xe8   : > { %v3359_v12 = vpop.f32.mrb[0].mxu0  ;;  %v3362_v13 = vpop.f32.mrb[0].mxu1 }
  0xe9   : > { %v553_v14 = vadd.f32 %v3359_v12, %v463_v11  ;;  %v563_v15 = vadd.f32 %v3362_v13, %v463_v11  ;;  %v547_v16 = vpop.f32.mrb[1].mxu0  ;;  %v557_v17 = vpop.f32.mrb[1].mxu1 }
  0xea   : > { %v548_v20 = vadd.f32 %v547_v16, %v463_v11  ;;  %v558_v21 = vadd.f32 %v557_v17, %v463_v11 }
  0xeb   : > { %v567_v22 = vmax.f32 %v553_v14, 0.0  ;;  %v569_v23 = vmax.f32 %v563_v15, 0.0 }
  0xec   : > { %v566_v26 = vmax.f32 %v548_v20, 0.0  ;;  %v568_v27 = vmax.f32 %v558_v21, 0.0 }
  0xed   : > { %v575_v28 = vadd.f32 %v571_v18, %v567_v22  ;;  %v577_v29 = vadd.f32 %v573_v19, %v569_v23 }
  0xee   : > { %v574_v30 = vadd.f32 %v570_v24, %v566_v26  ;;  %v576_v31 = vadd.f32 %v572_v25, %v568_v27 }
  0xef   : > { %580 = vst.msk [vmem:[#allocation2 + $0x8] sm:$0xff] %vm578_vm4, %v575_v28  ;;  %582 = vst.msk [vmem:[#allocation2 + $0x18] sm:$0xff] %vm578_vm4, %v577_v29 }
  0xf0   : > { %579 = vst.msk [vmem:[#allocation2] sm:$0xff] %vm578_vm4, %v574_v30  ;;  %581 = vst.msk [vmem:[#allocation2 + $0x10] sm:$0xff] %vm578_vm4, %v576_v31 }
  0xf1 PF: > { %vm589_vm5 = vcmask 261120   ;;  %v659_v50 = vld [vmem:[%s4013_s29] sm:$0xff]  ;;  %v660_v51 = vld [vmem:[%s4013_s29 + $0x8] sm:$0xff]  ;;  %v661_v52 = vld [vmem:[%s4013_s29 + $0x10] sm:$0xff]  ;;  %v643_v56 = vlaneseq  ;;  %vm774_vm6 = vcmask 64512   ;;  %s3915_s20 = smov 96  }
  0xf2   : > { %v3559_v53 = vpack.c.bf16 %v660_v51, %v659_v50  ;;  %v662_v54 = vld [vmem:[%s4013_s29 + $0x18] sm:$0xff]  ;;  %v4080_v59 = vld [vmem:[%s4519_s2] sm:$0x3]  ;;  %s3914_s29 = smov 88   ;;  %s3916_s24 = smov 120   ;;  %vm4130_vm7 = vmpackc.low %vm774_vm6, %vm774_vm6  ;;  %vm858_vm8 = vcmask 130048  }
  0xf3   : > { %v3563_v55 = vpack.c.bf16 %v662_v54, %v661_v52  ;;  %v4072_v57 = vshrl.u32 %v643_v56, 7  ;;  %v583_v12 = vld [vmem:[%s4008_s26] sm:$0xff]  ;;  %s3917_s25 = smov 80   ;;  %s3918_s27 = smov 112   ;;  %vm1596_vm9 = vcmask 195584   ;;  %vm2729_vm10 = vcmask 523264  }
  0xf4   : > { %3560 = vmatprep.subr.bf16.mxu1 %v3559_v53  ;;  %s3919_s28 = smov 64   ;;  %s3920_s30 = smov 48  }
  0xf5   : > { %3562 = vmatpush3.bf16.msra.mxu1 %v3559_v53  ;;  %v4075_v58 = vsub.s32 1, %v4072_v57  ;;  %v645_v11 = vsub.s32 0, %v4072_v57  ;;  %s3921_s23 = smov 72   ;;  %s3922_s12 = smov 56  }
  0xf6   : > { %v585_v33 = vld [vmem:[#allocation2 + $0x8] sm:$0xff]  ;;  %v587_v47 = vld [vmem:[#allocation2 + $0x18] sm:$0xff]  ;;  %3564 = vmatprep.subr.bf16.mxu1 %v3563_v55  ;;  %s3923_s21 = smov 104   ;;  %s3924_s14 = smov 40  }
  0xf7   : > { %v584_v32 = vld [vmem:[#allocation2] sm:$0xff]  ;;  %v593_v35 = vsel %vm589_vm5, %v585_v33, 0.0  ;;  %v586_v36 = vld [vmem:[#allocation2 + $0x10] sm:$0xff]  ;;  %v599_v49 = vsel %vm589_vm5, %v587_v47, 0.0  ;;  %v4084_v60 = vrot.slane %v4080_v59, %v4075_v58  ;;  %v646_v15 = vrot.slane %v583_v12, %v645_v11  ;;  %s3925_s15 = smov 8   ;;  %s3926_s19 = smov 16  }
  0xf8   : > { %v590_v34 = vsel %vm589_vm5, %v584_v32, 0.0  ;;  %v596_v37 = vsel %vm589_vm5, %v586_v36, 0.0  ;;  %v654_v19 = vrot.slane %v583_v12, %v4075_v58  ;;  %p3228_p5 = scmp.ne.s32.totalorder %s3994_s18, 1 }
  0xf9   : > { %591 = vadd.xlane.f32.xlu0 %v590_v34  ;;  %3566 = vmatpush3.bf16.msra.mxu1 %v3563_v55  ;;  %vm3012_vm11 = vcmask (!%p3228_p5), 15360  }
  0xfd   : > { %594 = vadd.xlane.f32.xlu0 %v593_v35 }
 0x101   : > { %597 = vadd.xlane.f32.xlu0 %v596_v37 }
 0x186   : > { %v592_v38 = vpop.xlane.xlu0 %591 }
 0x187   : > { %v603_v39 = vmul.f32 0.03125, %v592_v38 }
 0x189   : > { %v607_v40 = vsub.f32 %v584_v32, %v603_v39 }
 0x18a   : > { %v595_v41 = vpop.xlane.xlu0 %594 }
 0x18b   : > { %v604_v42 = vmul.f32 0.03125, %v595_v41  ;;  %v611_v43 = vmul.f32 %v607_v40, %v607_v40 }
 0x18d   : > { %v608_v44 = vsub.f32 %v585_v33, %v604_v42  ;;  %v615_v45 = vsel %vm589_vm5, %v611_v43, 0.0 }
 0x18e   : > { %616 = vadd.xlane.f32.xlu1 %v615_v45  ;;  %v598_v61 = vpop.xlane.xlu0 %597 }
 0x18f   : > { %v612_v46 = vmul.f32 %v608_v44, %v608_v44  ;;  %v605_v62 = vmul.f32 0.03125, %v598_v61 }
 0x191   : > { %v618_v48 = vsel %vm589_vm5, %v612_v46, 0.0  ;;  %v609_v63 = vsub.f32 %v586_v36, %v605_v62 }
 0x192   : > { %619 = vadd.xlane.f32.xlu1 %v618_v48 }
 0x193   : > { %v613_v1 = vmul.f32 %v609_v63, %v609_v63 }
 0x195   : > { %v621_v2 = vsel %vm589_vm5, %v613_v1, 0.0 }
 0x196   : > { %600 = vadd.xlane.f32.xlu1 %v599_v49  ;;  %622 = vadd.xlane.f32.xlu0 %v621_v2 }
 0x21b   : > { %v617_v3 = vpop.xlane.xlu1 %616 }
 0x21c   : > { %v627_v4 = vmul.f32 0.03125, %v617_v3 }
 0x21e   : > { %v631_v5 = vadd.f32 1e-06, %v627_v4 }
 0x21f   : > { %v620_v6 = vpop.xlane.xlu1 %619 }
 0x220   : > { %3796 = vrsqrt.f32 %v631_v5  ;;  %v628_v7 = vmul.f32 0.03125, %v620_v6 }
 0x222   : > { %v632_v8 = vadd.f32 1e-06, %v628_v7  ;;  %v4159_v7 = vrot.slane %v4080_v59, %v645_v11 }
 0x223   : > { %v601_v9 = vpop.xlane.xlu1 %600  ;;  %v623_v26 = vpop.xlane.xlu0 %622 }
 0x224   : > { %3798 = vrsqrt.f32 %v632_v8  ;;  %v606_v10 = vmul.f32 0.03125, %v601_v9  ;;  %v629_v27 = vmul.f32 0.03125, %v623_v26 }
 0x226   : > { %v610_v13 = vsub.f32 %v587_v47, %v606_v10  ;;  %v633_v28 = vadd.f32 1e-06, %v629_v27 }
 0x228   : > { %v614_v14 = vmul.f32 %v610_v13, %v610_v13  ;;  %3800 = vrsqrt.f32 %v633_v28 }
 0x22a   : > { %v3797_v16 = vpop.eup %3796  ;;  %v624_v17 = vsel %vm589_vm5, %v614_v14, 0.0 }
 0x22b   : > { %v639_v18 = vmul.f32 %v3797_v16, %v607_v40  ;;  %625 = vadd.xlane.f32.xlu1 %v624_v17  ;;  %v665_v40 = vsub.s32 2, %v4072_v57 }
 0x22d   : > { %v647_v20 = vmul.f32 %v646_v15, %v639_v18  ;;  %v4100_v41 = vrot.slane %v583_v12, %v665_v40 }
 0x22e   : > { %v3799_v21 = vpop.eup %3798 }
 0x22f   : > { %v655_v22 = vadd.f32 %v654_v19, %v647_v20  ;;  %v640_v23 = vmul.f32 %v3799_v21, %v608_v44 }
 0x231   : > { %3371 = vmatprep.mubr.msk.f32.mxu1 %vm589_vm5, %v655_v22  ;;  %v648_v24 = vmul.f32 %v646_v15, %v640_v23 }
 0x232   : > { %v3801_v29 = vpop.eup %3800 }
 0x233   : > { %v656_v25 = vadd.f32 %v654_v19, %v648_v24  ;;  %v641_v30 = vmul.f32 %v3801_v29, %v609_v63 }
 0x235   : > { %3372 = vmatmul.mubr.msk.f32.vlgmr.msra.gmra.mrb[0].mxu1 %vm589_vm5, %v656_v25  ;;  %v649_v31 = vmul.f32 %v646_v15, %v641_v30 }
 0x237   : > { %v657_v32 = vadd.f32 %v654_v19, %v649_v31 }
 0x239   : > { %3374 = vmatprep.mubr.msk.f32.mxu1 %vm589_vm5, %v657_v32 }
 0x2b8   : > { %v626_v33 = vpop.xlane.xlu1 %625 }
 0x2b9   : > { %v630_v34 = vmul.f32 0.03125, %v626_v33 }
 0x2bb   : > { %v634_v35 = vadd.f32 1e-06, %v630_v34 }
 0x2bd   : > { %3802 = vrsqrt.f32 %v634_v35 }
 0x2c7   : > { %v3803_v36 = vpop.eup %3802 }
 0x2c8   : > { %v642_v37 = vmul.f32 %v3803_v36, %v610_v13 }
 0x2ca   : > { %v650_v38 = vmul.f32 %v646_v15, %v642_v37 }
 0x2cc   : > { %v658_v39 = vadd.f32 %v654_v19, %v650_v38 }
 0x2ce   : > { %3375 = vmatmul.mubr.msk.f32.gmra.mrb[2].mxu1 %vm589_vm5, %v658_v39 }
 0x308   : > { %v3373_v42 = vpop.f32.mrb[0].mxu1 }
 0x309   : > { %v4103_v43 = vadd.f32 %v3373_v42, %v4100_v41  ;;  %v745_v44 = vpop.f32.mrb[1].mxu1 }
 0x30a   : > { %v4106_v45 = vadd.f32 %v745_v44, %v4100_v41 }
 0x30c   : > { %3381 = vmatprep.mubr.msk.f32.mxu1 %vm774_vm6, %v4106_v45  ;;  %v4112_v46 = vpack.i.bf16 %v4103_v43, %v4106_v45 }
 0x30e   : > { %3722 = vrot.lane.b32.xlu1 %v4112_v46, %s3914_s29  ;;  %3717 = vrot.lane.b32.xlu0 %v4112_v46, %s3915_s20 }
 0x312   : > { %968 = vrot.lane.b32.xlu1 %v4106_v45, %s3916_s24  ;;  %970 = vrot.lane.b32.xlu0 %v4103_v43, %s3916_s24 }
 0x316   : > { %3727 = vrot.lane.b32.xlu1 %v4112_v46, %s3917_s25  ;;  %1170 = vrot.lane.b32.xlu0 %v4103_v43, %s3918_s27 }
 0x31a   : > { %1168 = vrot.lane.b32.xlu1 %v4106_v45, %s3918_s27 }
 0x380   : > { %v3723_v47 = vpop.permute.xlu1 %3722  ;;  %v3718_v48 = vpop.permute.xlu0 %3717 }
 0x381   : > { %v3725_v49 = vunpack.i.h.bf16 %v3723_v47  ;;  %v3724_v50 = vunpack.i.l.bf16 %v3723_v47  ;;  %v3720_v51 = vunpack.i.h.bf16 %v3718_v48  ;;  %v3719_v52 = vunpack.i.l.bf16 %v3718_v48 }
 0x383   : > { %v3567_v54 = vpack.c.bf16 %v3720_v51, %v3719_v52  ;;  %v3577_v55 = vpack.c.bf16 %v3725_v49, %v3724_v50 }
 0x384   : > { %v969_v56 = vpop.permute.xlu1 %968  ;;  %v971_v3 = vpop.permute.xlu0 %970 }
 0x385   : > { %3569 = vmatprep.subr.msk.bf16.mxu1 %vm4130_vm7, %v3567_v54  ;;  %3579 = vmatprep.subr.msk.bf16.mxu0 %vm4130_vm7, %v3577_v55 }
 0x386   : > { %3395 = vmatprep.mubr.msk.f32.mxu0 %vm774_vm6, %v969_v56  ;;  %3572 = vmatpush3.bf16.xpose.msk.msra.mxu1 %vm4130_vm7, %v3567_v54 }
 0x387   : > { %3582 = vmatpush3.bf16.xpose.msk.msra.mxu0 %vm4130_vm7, %v3577_v55 }
 0x388   : > { %v3728_v61 = vpop.permute.xlu1 %3727  ;;  %v1171_v4 = vpop.permute.xlu0 %1170 }
 0x389   : > { %v3730_v62 = vunpack.i.h.bf16 %v3728_v61  ;;  %v3729_v63 = vunpack.i.l.bf16 %v3728_v61 }
 0x38b   : > { %v3587_v1 = vpack.c.bf16 %v3730_v62, %v3729_v63 }
 0x38c   : > { %v1169_v2 = vpop.permute.xlu1 %1168 }
 0x38d   : > { %3382 = vmatmul.mubr.msk.f32.vlgmr.msra.gmra.mrb[4].mxu1 %vm774_vm6, %v4103_v43  ;;  %3589 = vmatprep.subr.msk.bf16.mxu0 %vm4130_vm7, %v3587_v1 }
 0x38e   : > { %3396 = vmatmul.mubr.msk.f32.vlgmr.msra.gmra.mrb[0].mxu0 %vm774_vm6, %v971_v3 }
 0x38f   : > { %3592 = vmatpush3.bf16.xpose.msk.msra.mxu0 %vm4130_vm7, %v3587_v1  ;;  %3409 = vmatprep.mubr.msk.f32.mxu0 %vm774_vm6, %v1169_v2 }
 0x396   : > { %3410 = vmatmul.mubr.msk.f32.vlgmr.msra.gmra.mrb[2].mxu0 %vm774_vm6, %v1171_v4 }
 0x3a1   : > { %v4152_v5 = vpop.f32.mrb[2].mxu1 }
 0x3a2   : > { %v4154_v6 = vpop.f32.mrb[3].mxu1 }
 0x460   : > { %v3383_v8 = vpop.f32.mrb[4].mxu1 }
 0x461   : > { %v855_v9 = vadd.f32 %v3383_v8, %v4159_v7  ;;  %v3397_v10 = vpop.f32.mrb[0].mxu0  ;;  %v849_v12 = vpop.f32.mrb[5].mxu1 }
 0x462   : > { %v850_v13 = vadd.f32 %v849_v12, %v4159_v7  ;;  %v1050_v14 = vpop.f32.mrb[1].mxu0  ;;  %v1056_v59 = vadd.f32 %v3397_v10, %v4159_v7 }
 0x463   : > { %v1051_v15 = vadd.f32 %v1050_v14, %v4159_v7  ;;  %v862_v16 = vsel %vm858_vm8, %v855_v9, -inf }
 0x464   : > { %863 = vmax.xlane.f32.xlu0 %v862_v16  ;;  %v859_v17 = vsel %vm858_vm8, %v850_v13, -inf  ;;  %v1062_v22 = vsel %vm858_vm8, %v1056_v59, -inf }
 0x465   : > { %860 = vmax.xlane.f32.xlu1 %v859_v17  ;;  %v1059_v11 = vsel %vm858_vm8, %v1051_v15, -inf }
 0x468   : > { %1060 = vmax.xlane.f32.xlu0 %v1059_v11 }
 0x469   : > { %v3411_v18 = vpop.f32.mrb[2].mxu0 }
 0x46a   : > { %v1250_v19 = vpop.f32.mrb[3].mxu0  ;;  %v1256_v20 = vadd.f32 %v3411_v18, %v4159_v7 }
 0x46b   : > { %v1251_v21 = vadd.f32 %v1250_v19, %v4159_v7 }
 0x46c   : > { %1063 = vmax.xlane.f32.xlu0 %v1062_v22  ;;  %v1262_v24 = vsel %vm858_vm8, %v1256_v20, -inf }
 0x46d   : > { %v1259_v23 = vsel %vm858_vm8, %v1251_v21, -inf }
 0x46e   : > { %1260 = vmax.xlane.f32.xlu1 %v1259_v23 }
 0x470   : > { %1263 = vmax.xlane.f32.xlu0 %v1262_v24 }
 0x47f   : > { %3732 = vrot.lane.b32.xlu1 %v4112_v46, %s3919_s28 }
 0x4f1   : > { %v864_v25 = vpop.xlane.xlu0 %863 }
 0x4f2   : > { %v866_v26 = vsub.f32 %v855_v9, %v864_v25  ;;  %v861_v27 = vpop.xlane.xlu1 %860 }
 0x4f3   : > { %v865_v28 = vsub.f32 %v850_v13, %v861_v27 }
 0x4f4   : > { %v869_v29 = vmul.f32 1.442695, %v866_v26 }
 0x4f5   : > { %v867_v30 = vmul.f32 1.442695, %v865_v28  ;;  %v1061_v31 = vpop.xlane.xlu0 %1060 }
 0x4f6   : > { %3804 = vpow2.f32 %v869_v29  ;;  %v1065_v32 = vsub.f32 %v1051_v15, %v1061_v31 }
 0x4f7   : > { %3806 = vpow2.f32 %v867_v30 }
 0x4f8   : > { %v1067_v33 = vmul.f32 1.442695, %v1065_v32 }
 0x4f9   : > { %v1064_v34 = vpop.xlane.xlu0 %1063 }
 0x4fa   : > { %3808 = vpow2.f32 %v1067_v33  ;;  %v1066_v35 = vsub.f32 %v1056_v59, %v1064_v34 }
 0x4fb   : > { %v1261_v36 = vpop.xlane.xlu1 %1260 }
 0x4fc   : > { %v1069_v37 = vmul.f32 1.442695, %v1066_v35  ;;  %v1265_v2 = vsub.f32 %v1251_v21, %v1261_v36 }
 0x4fd   : > { %v1264_v38 = vpop.xlane.xlu0 %1263 }
 0x4fe   : > { %3810 = vpow2.f32 %v1069_v37  ;;  %v1266_v39 = vsub.f32 %v1256_v20, %v1264_v38  ;;  %v1267_v3 = vmul.f32 1.442695, %v1265_v2 }
 0x4ff   : > { %v3733_v42 = vpop.permute.xlu1 %3732 }
 0x500   : > { %v3805_v44 = vpop.eup %3804  ;;  %v1269_v47 = vmul.f32 1.442695, %v1266_v39  ;;  %v3735_v48 = vunpack.i.h.bf16 %v3733_v42  ;;  %v3734_v49 = vunpack.i.l.bf16 %v3733_v42 }
 0x501   : > { %v3807_v50 = vpop.eup %3806  ;;  %v874_v51 = vsel %vm858_vm8, %v3805_v44, 0.0 }
 0x502   : > { %3812 = vpow2.f32 %v1269_v47  ;;  %v3573_v52 = vpack.c.bf16 %v3735_v48, %v3734_v49  ;;  %875 = vadd.xlane.f32.xlu0 %v874_v51  ;;  %v871_v54 = vsel %vm858_vm8, %v3807_v50, 0.0 }
 0x503   : > { %872 = vadd.xlane.f32.xlu1 %v871_v54  ;;  %3814 = vpow2.f32 %v1267_v3 }
 0x504   : > { %v3809_v55 = vpop.eup %3808  ;;  %3574 = vmatprep.subr.bf16.mxu1 %v3573_v52 }
 0x505   : > { %3576 = vmatpush3.bf16.msra.mxu1 %v3573_v52  ;;  %v1071_v56 = vsel %vm858_vm8, %v3809_v55, 0.0 }
 0x507   : > { %1072 = vadd.xlane.f32.xlu1 %v1071_v56 }
 0x508   : > { %v3811_v61 = vpop.eup %3810 }
 0x509   : > { %v1074_v62 = vsel %vm858_vm8, %v3811_v61, 0.0 }
 0x50a   : > { %1075 = vadd.xlane.f32.xlu0 %v1074_v62 }
 0x50c   : > { %v3813_v63 = vpop.eup %3812 }
 0x50d   : > { %v1274_v1 = vsel %vm858_vm8, %v3813_v63, 0.0  ;;  %v3815_v4 = vpop.eup %3814 }
 0x50e   : > { %1275 = vadd.xlane.f32.xlu0 %v1274_v1  ;;  %v1271_v8 = vsel %vm858_vm8, %v3815_v4, 0.0 }
 0x518   : > { %3742 = vrot.lane.b32.xlu1 %v4112_v46, %s3920_s30 }
 0x51c   : > { %3747 = vrot.lane.b32.xlu1 %v4112_v46, %s3921_s23 }
 0x524   : > { %3737 = vrot.lane.b32.xlu0 %v4112_v46, %s3922_s12 }
 0x528   : > { %1370 = vrot.lane.b32.xlu0 %v4103_v43, %s3923_s21 }
 0x540   : > { %1272 = vadd.xlane.f32.xlu1 %v1271_v8 }
 0x551   : > { %1368 = vrot.lane.b32.xlu1 %v4106_v45, %s3923_s21 }
 0x58f   : > { %v876_v9 = vpop.xlane.xlu0 %875 }
 0x590   : > { %3816 = vrcp.f32 %v876_v9  ;;  %v873_v10 = vpop.xlane.xlu1 %872 }
 0x591   : > { %3818 = vrcp.f32 %v873_v10 }
 0x594   : > { %v1073_v12 = vpop.xlane.xlu1 %1072 }
 0x595   : > { %3820 = vrcp.f32 %v1073_v12 }
 0x597   : > { %v1076_v13 = vpop.xlane.xlu0 %1075 }
 0x598   : > { %3822 = vrcp.f32 %v1076_v13  ;;  %v3743_v15 = vpop.permute.xlu1 %3742  ;;  %v4225_v13 = vadd.f32 %v4152_v5, %v4100_v41 }
 0x599   : > { %v3745_v18 = vunpack.i.h.bf16 %v3743_v15  ;;  %v3744_v45 = vunpack.i.l.bf16 %v3743_v15 }
 0x59a   : > { %v3817_v14 = vpop.eup %3816 }
 0x59b   : > { %v3819_v43 = vpop.eup %3818  ;;  %v1276_v16 = vpop.xlane.xlu0 %1275  ;;  %v880_v59 = vmul.f32 %v3817_v14, %v3805_v44  ;;  %v3593_v26 = vpack.c.bf16 %v3745_v18, %v3744_v45  ;;  %v4229_v14 = vadd.f32 %v4154_v6, %v4100_v41 }
 0x59c   : > { %v878_v17 = vmul.f32 %v3819_v43, %v3807_v50  ;;  %v3748_v23 = vpop.permute.xlu1 %3747  ;;  %3824 = vrcp.f32 %v1276_v16 }
 0x59d   : > { %v3750_v27 = vunpack.i.h.bf16 %v3748_v23  ;;  %v3749_v28 = vunpack.i.l.bf16 %v3748_v23  ;;  %v4233_v43 = vpack.i.bf16 %v4225_v13, %v4229_v14 }
 0x59e   : > { %3388 = vmatprep.mubr.msk.f32.mxu1 %vm858_vm8, %v878_v17 }
 0x59f   : > { %v3821_v11 = vpop.eup %3820  ;;  %v3738_v19 = vpop.permute.xlu0 %3737  ;;  %3389 = vmatmul.mubr.msk.f32.vlgmr.msra.gmra.mrb[6].mxu1 %vm858_vm8, %v880_v59  ;;  %v3597_v30 = vpack.c.bf16 %v3750_v27, %v3749_v28 }
 0x5a0   : > { %v3740_v20 = vunpack.i.h.bf16 %v3738_v19  ;;  %v3739_v21 = vunpack.i.l.bf16 %v3738_v19  ;;  %v1078_v22 = vmul.f32 %v3821_v11, %v3809_v55 }
 0x5a2   : > { %v3583_v24 = vpack.c.bf16 %v3740_v20, %v3739_v21  ;;  %3402 = vmatprep.mubr.msk.f32.mxu1 %vm858_vm8, %v1078_v22  ;;  %v3823_v25 = vpop.eup %3822 }
 0x5a3   : > { %v1080_v29 = vmul.f32 %v3823_v25, %v3811_v61  ;;  %v1371_v37 = vpop.permute.xlu0 %1370 }
 0x5a4   : > { %3584 = vmatprep.subr.bf16.mxu1 %v3583_v24 }
 0x5a5   : > { %3586 = vmatpush3.bf16.msra.mxu1 %v3583_v24 }
 0x5a6   : > { %3594 = vmatprep.subr.bf16.mxu1 %v3593_v26  ;;  %v3825_v32 = vpop.eup %3824 }
 0x5a7   : > { %v1280_v35 = vmul.f32 %v3825_v32, %v3813_v63 }
 0x5a8   : > { %3403 = vmatmul.mubr.msk.f32.vlgmr.msra.gmra.mrb[8].mxu1 %vm858_vm8, %v1080_v29 }
 0x5a9   : > { %3596 = vmatpush3.bf16.msra.mxu1 %v3593_v26 }
 0x5aa   : > { %3599 = vmatprep.subr.msk.bf16.mxu1 %vm4130_vm7, %v3597_v30 }
 0x5cd   : > { %v1273_v31 = vpop.xlane.xlu1 %1272 }
 0x5ce   : > { %3826 = vrcp.f32 %v1273_v31 }
 0x5d1   : > { %v1369_v36 = vpop.permute.xlu1 %1368 }
 0x5d8   : > { %v3827_v33 = vpop.eup %3826 }
 0x5d9   : > { %v1278_v34 = vmul.f32 %v3827_v33, %v3815_v4 }
 0x5db   : > { %3416 = vmatprep.mubr.msk.f32.mxu1 %vm858_vm8, %v1278_v34 }
 0x5dc   : > { %3417 = vmatmul.mubr.msk.f32.vlgmr.msra.gmra.mrb[10].mxu1 %vm858_vm8, %v1280_v35 }
 0x5dd   : > { %3602 = vmatpush3.bf16.xpose.msk.msra.mxu1 %vm4130_vm7, %v3597_v30  ;;  %3423 = vmatprep.mubr.msk.f32.mxu1 %vm774_vm6, %v1369_v36 }
 0x5e4   : > { %3424 = vmatmul.mubr.msk.f32.vlgmr.msra.gmra.mrb[12].mxu1 %vm774_vm6, %v1371_v37 }
 0x672   : > { %v4203_v38 = vpop.f32.mrb[6].mxu1 }
 0x673   : > { %v4205_v39 = vpop.f32.mrb[7].mxu1 }
 0x67b   : > { %v4207_v42 = vpop.f32.mrb[8].mxu1 }
 0x67c   : > { %v4209_v44 = vpop.f32.mrb[9].mxu1 }
 0x6af   : > { %v4211_v47 = vpop.f32.mrb[10].mxu1 }
 0x6b0   : > { %v4213_v48 = vpop.f32.mrb[11].mxu1 }
 0x6b7   : > { %v3425_v49 = vpop.f32.mrb[12].mxu1 }
 0x6b8   : > { %v1456_v50 = vadd.f32 %v3425_v49, %v4159_v7  ;;  %v1450_v51 = vpop.f32.mrb[13].mxu1 }
 0x6b9   : > { %v1451_v52 = vadd.f32 %v1450_v51, %v4159_v7 }
 0x6ba   : > { %v1462_v54 = vsel %vm858_vm8, %v1456_v50, -inf }
 0x6bb   : > { %1463 = vmax.xlane.f32.xlu0 %v1462_v54  ;;  %v1459_v55 = vsel %vm858_vm8, %v1451_v52, -inf }
 0x6bc   : > { %1460 = vmax.xlane.f32.xlu1 %v1459_v55 }
 0x6cd   : > { %3752 = vrot.lane.b32.xlu1 %v4112_v46, %s3924_s14 }
 0x748   : > { %v1464_v56 = vpop.xlane.xlu0 %1463 }
 0x749   : > { %v1466_v61 = vsub.f32 %v1456_v50, %v1464_v56  ;;  %v1461_v62 = vpop.xlane.xlu1 %1460 }
 0x74a   : > { %v1465_v63 = vsub.f32 %v1451_v52, %v1461_v62 }
 0x74b   : > { %v1469_v1 = vmul.f32 1.442695, %v1466_v61 }
 0x74c   : > { %v1467_v2 = vmul.f32 1.442695, %v1465_v63 }
 0x74d   : > { %3828 = vpow2.f32 %v1469_v1  ;;  %v3753_v3 = vpop.permute.xlu1 %3752 }
 0x74e   : > { %v3755_v4 = vunpack.i.h.bf16 %v3753_v3  ;;  %v3754_v7 = vunpack.i.l.bf16 %v3753_v3  ;;  %3830 = vpow2.f32 %v1467_v2 }
 0x750   : > { %v3603_v8 = vpack.c.bf16 %v3755_v4, %v3754_v7 }
 0x752   : > { %3604 = vmatprep.subr.bf16.mxu0 %v3603_v8 }
 0x753   : > { %3606 = vmatpush3.bf16.msra.mxu0 %v3603_v8 }
 0x757   : > { %v3829_v9 = vpop.eup %3828 }
 0x758   : > { %v1474_v10 = vsel %vm858_vm8, %v3829_v9, 0.0  ;;  %v3831_v12 = vpop.eup %3830 }
 0x759   : > { %1475 = vadd.xlane.f32.xlu0 %v1474_v10  ;;  %v1471_v46 = vsel %vm858_vm8, %v3831_v12, 0.0 }
 0x75d   : > { %1472 = vadd.xlane.f32.xlu0 %v1471_v46 }
 0x773   : > { %3757 = vrot.lane.b32.xlu0 %v4233_v43, %s3915_s20 }
 0x7e6   : > { %v1476_v15 = vpop.xlane.xlu0 %1475 }
 0x7e7   : > { %3832 = vrcp.f32 %v1476_v15 }
 0x7ea   : > { %v1473_v16 = vpop.xlane.xlu0 %1472 }
 0x7eb   : > { %3834 = vrcp.f32 %v1473_v16 }
 0x7ee   : > { %v3758_v17 = vpop.permute.xlu0 %3757 }
 0x7ef   : > { %v3760_v59 = vunpack.i.h.bf16 %v3758_v17  ;;  %v3759_v11 = vunpack.i.l.bf16 %v3758_v17 }
 0x7f1   : > { %v3607_v5 = vpack.c.bf16 %v3760_v59, %v3759_v11  ;;  %v3833_v41 = vpop.eup %3832 }
 0x7f2   : > { %v1480_v19 = vmul.f32 %v3833_v41, %v3829_v9 }
 0x7f3   : > { %3609 = vmatprep.subr.msk.bf16.mxu0 %vm4130_vm7, %v3607_v5 }
 0x7f5   : > { %v3835_v6 = vpop.eup %3834 }
 0x7f6   : > { %v1478_v18 = vmul.f32 %v3835_v6, %v3831_v12 }
 0x7f8   : > { %3430 = vmatprep.mubr.msk.f32.mxu0 %vm858_vm8, %v1478_v18 }
 0x7f9   : > { %3431 = vmatmul.mubr.msk.f32.vlgmr.msra.gmra.mrb[4].mxu0 %vm858_vm8, %v1480_v19 }
 0x7fa   : > { %3612 = vmatpush3.bf16.xpose.msk.msra.mxu0 %vm4130_vm7, %v3607_v5  ;;  %3437 = vmatprep.mubr.msk.f32.mxu0 %vm774_vm6, %v4229_v14 }
 0x801   : > { %3438 = vmatmul.mubr.msk.f32.vlgmr.msra.gmra.mrb[6].mxu0 %vm774_vm6, %v4225_v13 }
 0x8cc   : > { %v4247_v45 = vpop.f32.mrb[4].mxu0 }
 0x8cd   : > { %v4249_v20 = vpop.f32.mrb[5].mxu0 }
 0x8d4   : > { %v3439_v21 = vpop.f32.mrb[6].mxu0 }
 0x8d5   : > { %v1689_v22 = vadd.f32 %v3439_v21, %v4084_v60  ;;  %v1683_v23 = vpop.f32.mrb[7].mxu0 }
 0x8d6   : > { %v1684_v24 = vadd.f32 %v1683_v23, %v4084_v60 }
 0x8d7   : > { %v1695_v25 = vsel %vm858_vm8, %v1689_v22, -inf }
 0x8d8   : > { %1696 = vmax.xlane.f32.xlu0 %v1695_v25  ;;  %v1692_v26 = vsel %vm858_vm8, %v1684_v24, -inf }
 0x8d9   : > { %1693 = vmax.xlane.f32.xlu1 %v1692_v26 }
 0x8ea   : > { %3762 = vrot.lane.b32.xlu1 %v4233_v43, %s3919_s28 }
 0x8ee   : > { %1801 = vrot.lane.b32.xlu1 %v4229_v14, %s3916_s24 }
 0x965   : > { %v1697_v27 = vpop.xlane.xlu0 %1696 }
 0x966   : > { %v1699_v28 = vsub.f32 %v1689_v22, %v1697_v27  ;;  %v1694_v29 = vpop.xlane.xlu1 %1693 }
 0x967   : > { %v1698_v30 = vsub.f32 %v1684_v24, %v1694_v29 }
 0x968   : > { %v1702_v31 = vmul.f32 1.442695, %v1699_v28 }
 0x969   : > { %v1700_v32 = vmul.f32 1.442695, %v1698_v30 }
 0x96a   : > { %3836 = vpow2.f32 %v1702_v31  ;;  %v3763_v33 = vpop.permute.xlu1 %3762 }
 0x96b   : > { %3838 = vpow2.f32 %v1700_v32  ;;  %v3765_v34 = vunpack.i.h.bf16 %v3763_v33  ;;  %v3764_v35 = vunpack.i.l.bf16 %v3763_v33 }
 0x96d   : > { %v3613_v36 = vpack.c.bf16 %v3765_v34, %v3764_v35 }
 0x96e   : > { %v1802_v52 = vpop.permute.xlu1 %1801 }
 0x96f   : > { %3614 = vmatprep.subr.bf16.mxu1 %v3613_v36 }
 0x970   : > { %3616 = vmatpush3.bf16.msra.mxu1 %v3613_v36 }
 0x974   : > { %v3837_v37 = vpop.eup %3836 }
 0x975   : > { %v3839_v49 = vpop.eup %3838  ;;  %v1707_v50 = vsel %vm858_vm8, %v3837_v37, 0.0 }
 0x976   : > { %1708 = vadd.xlane.f32.xlu0 %v1707_v50  ;;  %v1704_v51 = vsel %vm858_vm8, %v3839_v49, 0.0 }
 0x977   : > { %1705 = vadd.xlane.f32.xlu1 %v1704_v51 }
 0x988   : > { %1803 = vrot.lane.b32.xlu1 %v4225_v13, %s3916_s24 }
 0x98c   : > { %3767 = vrot.lane.b32.xlu0 %v4233_v43, %s3914_s29  ;;  %s3927_s29 = smov 24  }
 0xa03   : > { %v1709_v54 = vpop.xlane.xlu0 %1708 }
 0xa04   : > { %3840 = vrcp.f32 %v1709_v54  ;;  %v1706_v55 = vpop.xlane.xlu1 %1705 }
 0xa05   : > { %3842 = vrcp.f32 %v1706_v55 }
 0xa07   : > { %v3768_v56 = vpop.permute.xlu0 %3767 }
 0xa08   : > { %v3770_v61 = vunpack.i.h.bf16 %v3768_v56  ;;  %v3769_v62 = vunpack.i.l.bf16 %v3768_v56  ;;  %v1804_v7 = vpop.permute.xlu1 %1803 }
 0xa0a   : > { %v3617_v63 = vpack.c.bf16 %v3770_v61, %v3769_v62 }
 0xa0c   : > { %3619 = vmatprep.subr.msk.bf16.mxu1 %vm4130_vm7, %v3617_v63 }
 0xa0e   : > { %v3841_v1 = vpop.eup %3840 }
 0xa0f   : > { %v3843_v2 = vpop.eup %3842  ;;  %v1713_v4 = vmul.f32 %v3841_v1, %v3837_v37 }
 0xa10   : > { %v1711_v3 = vmul.f32 %v3843_v2, %v3839_v49 }
 0xa12   : > { %3444 = vmatprep.mubr.msk.f32.mxu1 %vm858_vm8, %v1711_v3 }
 0xa13   : > { %3445 = vmatmul.mubr.msk.f32.vlgmr.msra.gmra.mrb[14].mxu1 %vm858_vm8, %v1713_v4 }
 0xa14   : > { %3622 = vmatpush3.bf16.xpose.msk.msra.mxu1 %vm4130_vm7, %v3617_v63  ;;  %3451 = vmatprep.mubr.msk.f32.mxu1 %vm774_vm6, %v1802_v52 }
 0xa1b   : > { %3452 = vmatmul.mubr.msk.f32.vlgmr.msra.gmra.mrb[16].mxu1 %vm774_vm6, %v1804_v7 }
 0xae6   : > { %v4273_v8 = vpop.f32.mrb[14].mxu1 }
 0xae7   : > { %v4275_v9 = vpop.f32.mrb[15].mxu1 }
 0xaee   : > { %v3453_v10 = vpop.f32.mrb[16].mxu1 }
 0xaef   : > { %v1889_v12 = vadd.f32 %v3453_v10, %v4084_v60  ;;  %v1883_v46 = vpop.f32.mrb[17].mxu1 }
 0xaf0   : > { %v1884_v15 = vadd.f32 %v1883_v46, %v4084_v60 }
 0xaf1   : > { %v1895_v16 = vsel %vm858_vm8, %v1889_v12, -inf }
 0xaf2   : > { %1896 = vmax.xlane.f32.xlu0 %v1895_v16  ;;  %v1892_v17 = vsel %vm858_vm8, %v1884_v15, -inf }
 0xaf3   : > { %1893 = vmax.xlane.f32.xlu1 %v1892_v17 }
 0xb04   : > { %3772 = vrot.lane.b32.xlu1 %v4233_v43, %s3922_s12 }
 0xb08   : > { %2001 = vrot.lane.b32.xlu1 %v4229_v14, %s3918_s27 }
 0xb0c   : > { %2003 = vrot.lane.b32.xlu1 %v4225_v13, %s3918_s27 }
 0xb7f   : > { %v1897_v59 = vpop.xlane.xlu0 %1896 }
 0xb80   : > { %v1899_v11 = vsub.f32 %v1889_v12, %v1897_v59  ;;  %v1894_v5 = vpop.xlane.xlu1 %1893 }
 0xb81   : > { %v1898_v41 = vsub.f32 %v1884_v15, %v1894_v5 }
 0xb82   : > { %v1902_v6 = vmul.f32 1.442695, %v1899_v11 }
 0xb83   : > { %v1900_v18 = vmul.f32 1.442695, %v1898_v41 }
 0xb84   : > { %3844 = vpow2.f32 %v1902_v6  ;;  %v3773_v19 = vpop.permute.xlu1 %3772 }
 0xb85   : > { %v3775_v21 = vunpack.i.h.bf16 %v3773_v19  ;;  %v3774_v22 = vunpack.i.l.bf16 %v3773_v19  ;;  %3846 = vpow2.f32 %v1900_v18 }
 0xb87   : > { %v3623_v23 = vpack.c.bf16 %v3775_v21, %v3774_v22 }
 0xb88   : > { %v2002_v49 = vpop.permute.xlu1 %2001 }
 0xb89   : > { %3624 = vmatprep.subr.bf16.mxu0 %v3623_v23 }
 0xb8a   : > { %3626 = vmatpush3.bf16.msra.mxu0 %v3623_v23 }
 0xb8c   : > { %v2004_v50 = vpop.permute.xlu1 %2003 }
 0xb8e   : > { %v3845_v24 = vpop.eup %3844 }
 0xb8f   : > { %v1907_v25 = vsel %vm858_vm8, %v3845_v24, 0.0  ;;  %v3847_v26 = vpop.eup %3846 }
 0xb90   : > { %1908 = vadd.xlane.f32.xlu0 %v1907_v25  ;;  %v1904_v27 = vsel %vm858_vm8, %v3847_v26, 0.0 }
 0xb94   : > { %1905 = vadd.xlane.f32.xlu0 %v1904_v27 }
 0xbaa   : > { %3777 = vrot.lane.b32.xlu0 %v4233_v43, %s3917_s25 }
 0xc1d   : > { %v1909_v28 = vpop.xlane.xlu0 %1908 }
 0xc1e   : > { %3848 = vrcp.f32 %v1909_v28 }
 0xc21   : > { %v1906_v29 = vpop.xlane.xlu0 %1905 }
 0xc22   : > { %3850 = vrcp.f32 %v1906_v29 }
 0xc25   : > { %v3778_v30 = vpop.permute.xlu0 %3777 }
 0xc26   : > { %v3780_v31 = vunpack.i.h.bf16 %v3778_v30  ;;  %v3779_v32 = vunpack.i.l.bf16 %v3778_v30 }
 0xc28   : > { %v3627_v33 = vpack.c.bf16 %v3780_v31, %v3779_v32  ;;  %v3849_v34 = vpop.eup %3848 }
 0xc29   : > { %v1913_v37 = vmul.f32 %v3849_v34, %v3845_v24 }
 0xc2a   : > { %3629 = vmatprep.subr.msk.bf16.mxu0 %vm4130_vm7, %v3627_v33 }
 0xc2c   : > { %v3851_v35 = vpop.eup %3850 }
 0xc2d   : > { %v1911_v36 = vmul.f32 %v3851_v35, %v3847_v26 }
 0xc2f   : > { %3458 = vmatprep.mubr.msk.f32.mxu0 %vm858_vm8, %v1911_v36 }
 0xc30   : > { %3459 = vmatmul.mubr.msk.f32.vlgmr.msra.gmra.mrb[8].mxu0 %vm858_vm8, %v1913_v37 }
 0xc31   : > { %3632 = vmatpush3.bf16.xpose.msk.msra.mxu0 %vm4130_vm7, %v3627_v33  ;;  %3465 = vmatprep.mubr.msk.f32.mxu0 %vm774_vm6, %v2002_v49 }
 0xc38   : > { %3466 = vmatmul.mubr.msk.f32.vlgmr.msra.gmra.mrb[10].mxu0 %vm774_vm6, %v2004_v50 }
 0xd03   : > { %v4299_v51 = vpop.f32.mrb[8].mxu0 }
 0xd04   : > { %v4301_v52 = vpop.f32.mrb[9].mxu0 }
 0xd0b   : > { %v3467_v54 = vpop.f32.mrb[10].mxu0 }
 0xd0c   : > { %v2089_v55 = vadd.f32 %v3467_v54, %v4084_v60  ;;  %v2083_v56 = vpop.f32.mrb[11].mxu0 }
 0xd0d   : > { %v2084_v61 = vadd.f32 %v2083_v56, %v4084_v60  ;;  %v2432_v56 = vld [vmem:[%s4018_s13 + $0x8] sm:$0xff] }
 0xd0e   : > { %v2095_v62 = vsel %vm858_vm8, %v2089_v55, -inf }
 0xd0f   : > { %2096 = vmax.xlane.f32.xlu0 %v2095_v62  ;;  %v2092_v63 = vsel %vm858_vm8, %v2084_v61, -inf }
 0xd10   : > { %2093 = vmax.xlane.f32.xlu1 %v2092_v63 }
 0xd21   : > { %3782 = vrot.lane.b32.xlu1 %v4233_v43, %s3920_s30 }
 0xd25   : > { %2201 = vrot.lane.b32.xlu1 %v4229_v14, %s3923_s21 }
 0xd29   : > { %2203 = vrot.lane.b32.xlu1 %v4225_v13, %s3923_s21 }
 0xd9c   : > { %v2097_v1 = vpop.xlane.xlu0 %2096 }
 0xd9d   : > { %v2099_v2 = vsub.f32 %v2089_v55, %v2097_v1  ;;  %v2094_v3 = vpop.xlane.xlu1 %2093  ;;  %v2431_v55 = vld [vmem:[%s4018_s13] sm:$0xff] }
 0xd9e   : > { %v2098_v4 = vsub.f32 %v2084_v61, %v2094_v3  ;;  %v3647_v61 = vpack.c.bf16 %v2432_v56, %v2431_v55 }
 0xd9f   : > { %v2102_v7 = vmul.f32 1.442695, %v2099_v2 }
 0xda0   : > { %v2100_v10 = vmul.f32 1.442695, %v2098_v4 }
 0xda1   : > { %3852 = vpow2.f32 %v2102_v7  ;;  %v3783_v12 = vpop.permute.xlu1 %3782  ;;  %v2433_v7 = vld [vmem:[%s4018_s13 + $0x10] sm:$0xff] }
 0xda2   : > { %v3785_v46 = vunpack.i.h.bf16 %v3783_v12  ;;  %v3784_v15 = vunpack.i.l.bf16 %v3783_v12  ;;  %3854 = vpow2.f32 %v2100_v10  ;;  %v2434_v10 = vld [vmem:[%s4018_s13 + $0x18] sm:$0xff] }
 0xda4   : > { %v3633_v16 = vpack.c.bf16 %v3785_v46, %v3784_v15 }
 0xda5   : > { %v2202_v25 = vpop.permute.xlu1 %2201 }
 0xda6   : > { %3634 = vmatprep.subr.bf16.mxu1 %v3633_v16 }
 0xda7   : > { %3636 = vmatpush3.bf16.msra.mxu1 %v3633_v16  ;;  %v3651_v16 = vpack.c.bf16 %v2434_v10, %v2433_v7  ;;  %v2608_v10 = vld [vmem:[%s4023_s16] sm:$0xff] }
 0xda9   : > { %v2204_v26 = vpop.permute.xlu1 %2203 }
 0xdab   : > { %v3853_v17 = vpop.eup %3852 }
 0xdac   : > { %v2107_v14 = vsel %vm858_vm8, %v3853_v17, 0.0  ;;  %v3855_v59 = vpop.eup %3854 }
 0xdad   : > { %2108 = vadd.xlane.f32.xlu0 %v2107_v14  ;;  %v2104_v13 = vsel %vm858_vm8, %v3855_v59, 0.0 }
 0xdb1   : > { %2105 = vadd.xlane.f32.xlu0 %v2104_v13 }
 0xdc7   : > { %3787 = vrot.lane.b32.xlu0 %v4233_v43, %s3921_s23 }
 0xe3a   : > { %v2109_v11 = vpop.xlane.xlu0 %2108 }
 0xe3b   : > { %3856 = vrcp.f32 %v2109_v11 }
 0xe3e   : > { %v2106_v5 = vpop.xlane.xlu0 %2105 }
 0xe3f   : > { %3858 = vrcp.f32 %v2106_v5 }
 0xe42   : > { %v3788_v41 = vpop.permute.xlu0 %3787 }
 0xe43   : > { %v3790_v6 = vunpack.i.h.bf16 %v3788_v41  ;;  %v3789_v18 = vunpack.i.l.bf16 %v3788_v41 }
 0xe45   : > { %v3637_v19 = vpack.c.bf16 %v3790_v6, %v3789_v18  ;;  %v3857_v21 = vpop.eup %3856 }
 0xe46   : > { %v2113_v24 = vmul.f32 %v3857_v21, %v3853_v17  ;;  %v4371_v21 = vld [vmem:[%s4008_s26] sm:$0xff] }
 0xe47   : > { %3639 = vmatprep.subr.msk.bf16.mxu1 %vm4130_vm7, %v3637_v19 }
 0xe49   : > { %v3859_v22 = vpop.eup %3858 }
 0xe4a   : > { %v2111_v23 = vmul.f32 %v3859_v22, %v3855_v59 }
 0xe4c   : > { %3472 = vmatprep.mubr.msk.f32.mxu1 %vm858_vm8, %v2111_v23 }
 0xe4d   : > { %3473 = vmatmul.mubr.msk.f32.vlgmr.msra.gmra.mrb[18].mxu1 %vm858_vm8, %v2113_v24  ;;  %v3877_v24 = vld [vmem:[#allocation2] sm:$0xff] }
 0xe4e   : > { %3642 = vmatpush3.bf16.xpose.msk.msra.mxu1 %vm4130_vm7, %v3637_v19  ;;  %3479 = vmatprep.mubr.msk.f32.mxu1 %vm774_vm6, %v2202_v25  ;;  %v2437_v19 = vsub.s32 3, %v4072_v57 }
 0xe55   : > { %3480 = vmatmul.mubr.msk.f32.vlgmr.msra.gmra.mrb[20].mxu1 %vm774_vm6, %v2204_v26  ;;  %v3878_v26 = vld [vmem:[#allocation2 + $0x8] sm:$0xff] }
 0xf20   : > { %v3474_v27 = vpop.f32.mrb[18].mxu1 }
 0xf21   : > { %v2192_v28 = vpop.f32.mrb[19].mxu1 }
 0xf28   : > { %v3481_v29 = vpop.f32.mrb[20].mxu1 }
 0xf29   : > { %v2289_v30 = vadd.f32 %v3481_v29, %v4084_v60  ;;  %v2283_v31 = vpop.f32.mrb[21].mxu1 }
 0xf2a   : > { %v2284_v32 = vadd.f32 %v2283_v31, %v4084_v60 }
 0xf2b   : > { %v2295_v33 = vsel %vm858_vm8, %v2289_v30, -inf }
 0xf2c   : > { %2296 = vmax.xlane.f32.xlu0 %v2295_v33  ;;  %v2292_v34 = vsel %vm858_vm8, %v2284_v32, -inf }
 0xf2d   : > { %2293 = vmax.xlane.f32.xlu1 %v2292_v34 }
 0xf3e   : > { %3792 = vrot.lane.b32.xlu1 %v4233_v43, %s3924_s14 }
 0xf42   : > { %1572 = vrot.lane.b32.xlu1 %v4207_v42, %s3925_s15 }
 0xf46   : > { %1578 = vrot.lane.b32.xlu1 %v4213_v48, %s3926_s19 }
 0xf4a   : > { %1580 = vrot.lane.b32.xlu1 %v4211_v47, %s3926_s19 }
 0xf4e   : > { %1588 = vrot.lane.b32.xlu1 %v4247_v45, %s3927_s29 }
 0xf52   : > { %2405 = vrot.lane.b32.xlu1 %v4299_v51, %s3925_s15 }
 0xf56   : > { %2413 = vrot.lane.b32.xlu1 %v3474_v27, %s3926_s19 }
 0xfb9   : > { %v2297_v60 = vpop.xlane.xlu0 %2296 }
 0xfba   : > { %v2299_v53 = vsub.f32 %v2289_v30, %v2297_v60  ;;  %v2294_v43 = vpop.xlane.xlu1 %2293 }
 0xfbb   : > { %v2298_v42 = vsub.f32 %v2284_v32, %v2294_v43 }
 0xfbc   : > { %v2302_v35 = vmul.f32 1.442695, %v2299_v53 }
 0xfbd   : > { %v2300_v36 = vmul.f32 1.442695, %v2298_v42 }
 0xfbe   : > { %v3793_v48 = vpop.permute.xlu1 %3792 }
 0xfbf   : > { %3860 = vpow2.f32 %v2300_v36  ;;  %v3795_v47 = vunpack.i.h.bf16 %v3793_v48  ;;  %v3794_v37 = vunpack.i.l.bf16 %v3793_v48 }
 0xfc0   : > { %3862 = vpow2.f32 %v2302_v35 }
 0xfc1   : > { %v3643_v49 = vpack.c.bf16 %v3795_v47, %v3794_v37 }
 0xfc2   : > { %v1573_v63 = vpop.permute.xlu1 %1572 }
 0xfc3   : > { %3644 = vmatprep.subr.bf16.mxu0 %v3643_v49  ;;  %v1593_v59 = vsel %vm774_vm6, %v4203_v38, %v1573_v63  ;;  %v2438_v38 = vrot.slane %v4371_v21, %v2437_v19 }
 0xfc4   : > { %3646 = vmatpush3.bf16.msra.mxu0 %v3643_v49 }
 0xfc5   : > { %3648 = vmatprep.subr.bf16.mxu0 %v3647_v61 }
 0xfc6   : > { %v1579_v2 = vpop.permute.xlu1 %1578 }
 0xfc9   : > { %v3861_v45 = vpop.eup %3860 }
 0xfca   : > { %v2304_v50 = vsel %vm858_vm8, %v3861_v45, 0.0  ;;  %v3863_v51 = vpop.eup %3862  ;;  %v1581_v46 = vpop.permute.xlu1 %1580 }
 0xfcb   : > { %2305 = vadd.xlane.f32.xlu0 %v2304_v50  ;;  %v2307_v54 = vsel %vm858_vm8, %v3863_v51, 0.0  ;;  %v1595_v13 = vsel %vm858_vm8, %v1593_v59, %v1581_v46  ;;  %v2611_v46 = vld [vmem:[%s4023_s16 + $0x18] sm:$0xff] }
 0xfcf   : > { %2308 = vadd.xlane.f32.xlu0 %v2307_v54 }
 0xfe5   : > { %1570 = vrot.lane.b32.xlu0 %v4209_v44, %s3925_s15 }
 0xfe9   : > { %1586 = vrot.lane.b32.xlu0 %v4249_v20, %s3927_s29 }
 0xfed   : > { %2403 = vrot.lane.b32.xlu0 %v4301_v52, %s3925_s15 }
 0xff1   : > { %2411 = vrot.lane.b32.xlu0 %v2192_v28, %s3926_s19 }
0x1058   : > { %v2306_v62 = vpop.xlane.xlu0 %2305 }
0x1059   : > { %3864 = vrcp.f32 %v2306_v62 }
0x105c   : > { %v2309_v1 = vpop.xlane.xlu0 %2308 }
0x105d   : > { %3866 = vrcp.f32 %v2309_v1  ;;  %v3880_v1 = vld [vmem:[#allocation2 + $0x18] sm:$0xff] }
0x1060   : > { %v1571_v44 = vpop.permute.xlu0 %1570 }
0x1061   : > { %v1592_v20 = vsel %vm774_vm6, %v4205_v39, %v1571_v44  ;;  %v1589_v39 = vpop.permute.xlu1 %1588 }
0x1062   : > { %v1594_v17 = vsel %vm858_vm8, %v1592_v20, %v1579_v2  ;;  %v1598_v11 = vsel %vm1596_vm9, %v1595_v13, %v1589_v39  ;;  %v2609_v20 = vld [vmem:[%s4023_s16 + $0x8] sm:$0xff] }
0x1063   : > { %v3865_v3 = vpop.eup %3864 }
0x1064   : > { %v2311_v4 = vmul.f32 %v3865_v3, %v3861_v45  ;;  %v1587_v52 = vpop.permute.xlu0 %1586 }
0x1065   : > { %v1597_v14 = vsel %vm1596_vm9, %v1594_v17, %v1587_v52  ;;  %v2406_v30 = vpop.permute.xlu1 %2405  ;;  %v3655_v52 = vpack.c.bf16 %v2609_v20, %v2608_v10 }
0x1066   : > { %3486 = vmatprep.mubr.msk.f32.mxu0 %vm858_vm8, %v2311_v4  ;;  %v2426_v53 = vsel %vm774_vm6, %v4273_v8, %v2406_v30 }
0x1067   : > { %v3867_v12 = vpop.eup %3866  ;;  %3656 = vmatprep.subr.bf16.mxu1 %v3655_v52 }
0x1068   : > { %v2313_v15 = vmul.f32 %v3867_v12, %v3863_v51  ;;  %v2404_v31 = vpop.permute.xlu0 %2403  ;;  %v2610_v12 = vld [vmem:[%s4023_s16 + $0x10] sm:$0xff]  ;;  %3658 = vmatpush3.bf16.msra.mxu1 %v3655_v52 }
0x1069   : > { %v2414_v32 = vpop.permute.xlu1 %2413  ;;  %v2425_v34 = vsel %vm774_vm6, %v4275_v9, %v2404_v31 }
0x106a   : > { %3487 = vmatmul.mubr.msk.f32.vlgmr.msra.gmra.mrb[12].mxu0 %vm858_vm8, %v2313_v15  ;;  %v2428_v35 = vsel %vm858_vm8, %v2426_v53, %v2414_v32  ;;  %v3659_v15 = vpack.c.bf16 %v2611_v46, %v2610_v12  ;;  %v2602_v32 = vsub.s32 5, %v4072_v57 }
0x106b   : > { %3650 = vmatpush3.bf16.msra.mxu0 %v3647_v61  ;;  %3497 = vmatprep.mubr.msk.f32.mxu0 %vm589_vm5, %v1597_v14  ;;  %v3879_v61 = vld [vmem:[#allocation2 + $0x10] sm:$0xff] }
0x106c   : > { %3652 = vmatprep.subr.bf16.mxu0 %v3651_v16  ;;  %v2412_v33 = vpop.permute.xlu0 %2411  ;;  %3660 = vmatprep.subr.bf16.mxu1 %v3659_v15 }
0x106d   : > { %v2427_v43 = vsel %vm858_vm8, %v2425_v34, %v2412_v33  ;;  %3662 = vmatpush3.bf16.msra.mxu1 %v3659_v15 }
0x106f   : > { %3654 = vmatpush3.bf16.msra.mxu0 %v3651_v16 }
0x1072   : > { %3498 = vmatmul.mubr.msk.f32.vlgmr.msra.gmra.mrb[14].mxu0 %vm589_vm5, %v1598_v11 }
0x113d   : > { %v3488_v5 = vpop.f32.mrb[12].mxu0 }
0x113e   : > { %2421 = vrot.lane.b32.xlu1 %v3488_v5, %s3927_s29  ;;  %v2392_v41 = vpop.f32.mrb[13].mxu0 }
0x113f   : > { %2419 = vrot.lane.b32.xlu0 %v2392_v41, %s3927_s29 }
0x1145   : > { %v3499_v6 = vpop.f32.mrb[14].mxu0 }
0x1146   : > { %v2517_v18 = vpop.f32.mrb[15].mxu0  ;;  %v2523_v23 = vadd.f32 %v3499_v6, %v2438_v38 }
0x1147   : > { %v2518_v22 = vadd.f32 %v2517_v18, %v2438_v38 }
0x1148   : > { %v4378_v27 = vadd.f32 %v3878_v26, %v2523_v23 }
0x1149   : > { %v4376_v25 = vadd.f32 %v3877_v24, %v2518_v22 }
0x114a   : > { %v2543_v29 = vsel %vm589_vm5, %v4378_v27, 0.0 }
0x114b   : > { %v2540_v28 = vsel %vm589_vm5, %v4376_v25, 0.0 }
0x115e   : > { %2541 = vadd.xlane.f32.xlu0 %v2540_v28  ;;  %v2594_v28 = vsub.s32 4, %v4072_v57 }
0x1160   : > { %v2595_v31 = vrot.slane %v4371_v21, %v2594_v28 }
0x1162   : > { %2544 = vadd.xlane.f32.xlu1 %v2543_v29 }
0x11b0   : > { %v2422_v60 = vpop.permute.xlu1 %2421 }
0x11b1   : > { %v2420_v42 = vpop.permute.xlu0 %2419  ;;  %v2430_v48 = vsel %vm1596_vm9, %v2428_v35, %v2422_v60  ;;  %v2603_v60 = vrot.slane %v4371_v21, %v2602_v32 }
0x11b2   : > { %v2429_v36 = vsel %vm1596_vm9, %v2427_v43, %v2420_v42 }
0x11b3   : > { %3500 = vmatprep.mubr.msk.f32.mxu0 %vm589_vm5, %v2429_v36  ;;  %v2717_v36 = vld [vmem:[%s4028_s22] sm:$0xff] }
0x11b4   : > { %3501 = vmatmul.mubr.msk.f32.gmra.mrb[16].mxu0 %vm589_vm5, %v2430_v48  ;;  %v2718_v48 = vld [vmem:[%s4028_s22 + $0x8] sm:$0xff] }
0x11eb   : > { %v2542_v45 = vpop.xlane.xlu0 %2541 }
0x11ec   : > { %v2552_v54 = vmul.f32 0.03125, %v2542_v45  ;;  %v2722_v45 = vld [vmem:[%s4028_s22 + $0x28] sm:$0xff] }
0x11ee   : > { %v2556_v63 = vsub.f32 %v4376_v25, %v2552_v54  ;;  %v2724_v54 = vld [vmem:[%s4028_s22 + $0x38] sm:$0xff] }
0x11ef   : > { %v2545_v47 = vpop.xlane.xlu1 %2544 }
0x11f0   : > { %v2553_v37 = vmul.f32 0.03125, %v2545_v47  ;;  %v2560_v4 = vmul.f32 %v2556_v63, %v2556_v63  ;;  %v2719_v47 = vld [vmem:[%s4028_s22 + $0x10] sm:$0xff] }
0x11f2   : > { %v2557_v9 = vsub.f32 %v4378_v27, %v2553_v37  ;;  %v2564_v7 = vsel %vm589_vm5, %v2560_v4, 0.0  ;;  %v3663_v37 = vpack.c.bf16 %v2718_v48, %v2717_v36 }
0x11f4   : > { %v2561_v49 = vmul.f32 %v2557_v9, %v2557_v9  ;;  %3664 = vmatprep.subr.bf16.mxu0 %v3663_v37 }
0x11f5   : > { %3666 = vmatpush3.bf16.msra.mxu0 %v3663_v37 }
0x11f6   : > { %v2567_v8 = vsel %vm589_vm5, %v2561_v49, 0.0 }
0x11f7   : > { %2568 = vadd.xlane.f32.xlu1 %v2567_v8  ;;  %v2721_v8 = vld [vmem:[%s4028_s22 + $0x20] sm:$0xff] }
0x1284   : > { %v2569_v16 = vpop.xlane.xlu1 %2568 }
0x1285   : > { %v2577_v17 = vmul.f32 0.03125, %v2569_v16  ;;  %v2614_v16 = vsub.s32 6, %v4072_v57 }
0x1287   : > { %v3502_v50 = vpop.f32.mrb[16].mxu0  ;;  %v2581_v13 = vadd.f32 1e-06, %v2577_v17  ;;  %v2615_v17 = vrot.slane %v4371_v21, %v2614_v16 }
0x1288   : > { %v2527_v51 = vpop.f32.mrb[17].mxu0  ;;  %v2533_v55 = vadd.f32 %v3502_v50, %v2438_v38  ;;  %v3671_v50 = vpack.c.bf16 %v2722_v45, %v2721_v8 }
0x1289   : > { %v2528_v56 = vadd.f32 %v2527_v51, %v2438_v38  ;;  %3868 = vrsqrt.f32 %v2581_v13  ;;  %v2723_v51 = vld [vmem:[%s4028_s22 + $0x30] sm:$0xff] }
0x128a   : > { %v4399_v44 = vadd.f32 %v3880_v1, %v2533_v55  ;;  %v3675_v55 = vpack.c.bf16 %v2724_v54, %v2723_v51 }
0x128b   : > { %v4396_v62 = vadd.f32 %v3879_v61, %v2528_v56 }
0x128c   : > { %v2549_v3 = vsel %vm589_vm5, %v4399_v44, 0.0 }
0x128d   : > { %v2546_v2 = vsel %vm589_vm5, %v4396_v62, 0.0 }
0x128e   : > { %2547 = vadd.xlane.f32.xlu0 %v2546_v2 }
0x1292   : > { %2550 = vadd.xlane.f32.xlu0 %v2549_v3 }
0x1293   : > { %v3869_v29 = vpop.eup %3868 }
0x1294   : > { %v2589_v30 = vmul.f32 %v3869_v29, %v2557_v9  ;;  %v2720_v9 = vld [vmem:[%s4028_s22 + $0x18] sm:$0xff] }
0x1295   : > { %v3667_v49 = vpack.c.bf16 %v2720_v9, %v2719_v47 }
0x1296   : > { %2565 = vadd.xlane.f32.xlu0 %v2564_v7  ;;  %v2597_v53 = vmul.f32 %v2595_v31, %v2589_v30 }
0x1297   : > { %3668 = vmatprep.subr.bf16.mxu0 %v3667_v49 }
0x1298   : > { %v2605_v35 = vadd.f32 %v2603_v60, %v2597_v53  ;;  %3670 = vmatpush3.bf16.msra.mxu0 %v3667_v49 }
0x1299   : > { %3672 = vmatprep.subr.bf16.mxu0 %v3671_v50 }
0x129c   : > { %3674 = vmatpush3.bf16.msra.mxu0 %v3671_v50 }
0x129d   : > { %3676 = vmatprep.subr.bf16.mxu0 %v3675_v55 }
0x12a0   : > { %3678 = vmatpush3.bf16.msra.mxu0 %v3675_v55 }
0x131b   : > { %v2548_v14 = vpop.xlane.xlu0 %2547 }
0x131c   : > { %v2554_v39 = vmul.f32 0.03125, %v2548_v14 }
0x131e   : > { %v2558_v59 = vsub.f32 %v4396_v62, %v2554_v39 }
0x131f   : > { %v2551_v11 = vpop.xlane.xlu0 %2550 }
0x1320   : > { %v2555_v5 = vmul.f32 0.03125, %v2551_v11  ;;  %v2562_v41 = vmul.f32 %v2558_v59, %v2558_v59 }
0x1322   : > { %v2559_v6 = vsub.f32 %v4399_v44, %v2555_v5  ;;  %v2570_v18 = vsel %vm589_vm5, %v2562_v41, 0.0 }
0x1323   : > { %2571 = vadd.xlane.f32.xlu0 %v2570_v18  ;;  %v2566_v38 = vpop.xlane.xlu0 %2565 }
0x1324   : > { %v2576_v22 = vmul.f32 0.03125, %v2566_v38  ;;  %v2563_v23 = vmul.f32 %v2559_v6, %v2559_v6 }
0x1326   : > { %v2580_v24 = vadd.f32 1e-06, %v2576_v22  ;;  %v2573_v26 = vsel %vm589_vm5, %v2563_v23, 0.0 }
0x1327   : > { %2574 = vadd.xlane.f32.xlu1 %v2573_v26 }
0x1328   : > { %3870 = vrsqrt.f32 %v2580_v24  ;;  %v2727_v24 = vsub.s32 7, %v4072_v57 }
0x132a   : > { %v2728_v26 = vrot.slane %v4371_v21, %v2727_v24  ;;  %v2902_v24 = vrot.slane (!%p3228_p5), %v4002_v0, %v665_v40 }
0x1332   : > { %v3871_v33 = vpop.eup %3870 }
0x1333   : > { %v2588_v34 = vmul.f32 %v3871_v33, %v2556_v63 }
0x1335   : > { %v2596_v43 = vmul.f32 %v2595_v31, %v2588_v34 }
0x1337   : > { %v2604_v42 = vadd.f32 %v2603_v60, %v2596_v43 }
0x1339   : > { %3511 = vmatprep.mubr.msk.f32.mxu1 %vm589_vm5, %v2604_v42 }
0x133a   : > { %3512 = vmatmul.mubr.msk.f32.vlgmr.msra.gmra.mrb[22].mxu1 %vm589_vm5, %v2605_v35 }
0x13b0   : > { %v2572_v56 = vpop.xlane.xlu0 %2571 }
0x13b1   : > { %v2578_v61 = vmul.f32 0.03125, %v2572_v56 }
0x13b3   : > { %v2582_v63 = vadd.f32 1e-06, %v2578_v61 }
0x13b4   : > { %v2575_v1 = vpop.xlane.xlu1 %2574 }
0x13b5   : > { %3872 = vrsqrt.f32 %v2582_v63  ;;  %v2579_v2 = vmul.f32 0.03125, %v2575_v1 }
0x13b7   : > { %v2583_v3 = vadd.f32 1e-06, %v2579_v2 }
0x13b9   : > { %3874 = vrsqrt.f32 %v2583_v3 }
0x13bf   : > { %v3873_v4 = vpop.eup %3872 }
0x13c0   : > { %v2590_v7 = vmul.f32 %v3873_v4, %v2558_v59 }
0x13c2   : > { %v2598_v10 = vmul.f32 %v2595_v31, %v2590_v7  ;;  %v2907_v7 = vld [vmem:[%s4522_s5] sm:$0xff] (!%p3228_p5) }
0x13c3   : > { %v3875_v20 = vpop.eup %3874 }
0x13c4   : > { %v2606_v12 = vadd.f32 %v2603_v60, %v2598_v10  ;;  %v2591_v52 = vmul.f32 %v3875_v20, %v2559_v6  ;;  %v2908_v10 = vld [vmem:[%s4522_s5 + $0x8] sm:$0xff] (!%p3228_p5)  ;;  %v2909_v20 = vld [vmem:[%s4522_s5 + $0x10] sm:$0xff] (!%p3228_p5) }
0x13c6   : > { %3514 = vmatprep.mubr.msk.f32.mxu1 %vm589_vm5, %v2606_v12  ;;  %v2599_v46 = vmul.f32 %v2595_v31, %v2591_v52  ;;  %v3679_v12 = vpack.c.bf16 (!%p3228_p5), %v2908_v10, %v2907_v7  ;;  %v2910_v52 = vld [vmem:[%s4522_s5 + $0x18] sm:$0xff] (!%p3228_p5) }
0x13c8   : > { %v2607_v15 = vadd.f32 %v2603_v60, %v2599_v46  ;;  %v3683_v46 = vpack.c.bf16 (!%p3228_p5), %v2910_v52, %v2909_v20  ;;  %3680 = vmatprep.subr.bf16.mxu0 (!%p3228_p5), %v3679_v12  ;;  %3689 = vmatprep.subr.bf16.mxu1 (!%p3228_p5), %v3679_v12 }
0x13c9   : > { %3691 = vmatpush3.bf16.msra.mxu1 (!%p3228_p5), %v3679_v12 }
0x13ca   : > { %3515 = vmatmul.mubr.msk.f32.gmra.mrb[24].mxu1 %vm589_vm5, %v2607_v15  ;;  %3690 = vmatprep.subr.bf16.mxu1 (!%p3228_p5), %v3683_v46 }
0x13cd   : > { %3692 = vmatpush3.bf16.msra.mxu1 (!%p3228_p5), %v3683_v46 }
0x140d   : > { %v3513_v14 = vpop.f32.mrb[22].mxu1 }
0x140e   : > { %v2700_v39 = vadd.f32 %v3513_v14, %v2615_v17  ;;  %v2694_v13 = vpop.f32.mrb[23].mxu1 }
0x140f   : > { %v2695_v11 = vadd.f32 %v2694_v13, %v2615_v17 }
0x1410   : > { %v2714_v5 = vmax.f32 %v2700_v39, 0.0 }
0x1411   : > { %v2713_v59 = vmax.f32 %v2695_v11, 0.0 }
0x1413   : > { %3533 = vmatprep.mubr.msk.f32.mxu0 %vm2729_vm10, %v2713_v59 }
0x1414   : > { %3534 = vmatmul.mubr.msk.f32.vlgmr.msra.gmra.mrb[18].mxu0 %vm2729_vm10, %v2714_v5 }
0x1415   : > { %3682 = vmatpush3.bf16.msra.mxu0 (!%p3228_p5), %v3679_v12 }
0x1416   : > { %3684 = vmatprep.subr.bf16.mxu0 (!%p3228_p5), %v3683_v46 }
0x1419   : > { %3686 = vmatpush3.bf16.msra.mxu0 (!%p3228_p5), %v3683_v46 }
0x149d   : > { %v3516_v41 = vpop.f32.mrb[24].mxu1 }
0x149e   : > { %v2710_v6 = vadd.f32 %v3516_v41, %v2615_v17  ;;  %v2704_v18 = vpop.f32.mrb[25].mxu1 }
0x149f   : > { %v2705_v38 = vadd.f32 %v2704_v18, %v2615_v17 }
0x14a0   : > { %v2716_v23 = vmax.f32 %v2710_v6, 0.0 }
0x14a1   : > { %v2715_v22 = vmax.f32 %v2705_v38, 0.0  ;;  %v2894_v38 = vrot.slane (!%p3228_p5), %v4002_v0, %v4075_v58 }
0x14a3   : > { %3536 = vmatprep.mubr.msk.f32.mxu0 %vm2729_vm10, %v2715_v22 }
0x14a4   : > { %3537 = vmatmul.mubr.msk.f32.gmra.mrb[20].mxu0 %vm2729_vm10, %v2716_v23 }
0x14e7   : > { %v3535_v28 = vpop.f32.mrb[18].mxu0 }
0x14e8   : > { %v2814_v29 = vadd.f32 %v3535_v28, %v2728_v26  ;;  %v2808_v30 = vpop.f32.mrb[19].mxu0 }
0x14e9   : > { %v2809_v31 = vadd.f32 %v2808_v30, %v2728_v26 }
0x14ea   : > { %v2828_v32 = vadd.f32 %v2814_v29, %v4378_v27 }
0x14eb   : > { %v2827_v33 = vadd.f32 %v2809_v31, %v4376_v25 }
0x14ec   : > { %2832 = vst.msk [vmem:[#allocation2 + $0x8] sm:$0xff] %vm589_vm5, %v2828_v32  ;;  %v2842_v27 = vsel (!%p3228_p5), %vm589_vm5, %v2828_v32, 0.0 }
0x14ed   : > { %2831 = vst.msk [vmem:[#allocation2] sm:$0xff] %vm589_vm5, %v2827_v33  ;;  %v2839_v25 = vsel (!%p3228_p5), %vm589_vm5, %v2827_v33, 0.0  ;;  %2843 = vadd.xlane.f32.xlu1 (!%p3228_p5), %v2842_v27 }
0x14ee   : > { %2840 = vadd.xlane.f32.xlu0 (!%p3228_p5), %v2839_v25 }
0x1577   : > { %v3538_v34 = vpop.f32.mrb[20].mxu0  ;;  %2838 = sbr.rel (%p3228_p5) target bundleno = 6353 (0x18d1), region = 72 }
0x1578   : > { %v2824_v60 = vadd.f32 %v3538_v34, %v2728_v26  ;;  %v2818_v53 = vpop.f32.mrb[21].mxu0 }
0x1579   : > { %v2819_v43 = vadd.f32 %v2818_v53, %v2728_v26 }
0x157a   : > { %v2830_v42 = vadd.f32 %v2824_v60, %v4399_v44  ;;  %v2844_v44 = vpop.xlane.xlu1 (!%p3228_p5), %2843 }
0x157b   : > { %v2829_v21 = vadd.f32 %v2819_v43, %v4396_v62  ;;  %v2841_v62 = vpop.xlane.xlu0 (!%p3228_p5), %2840  ;;  %v2852_v47 = vmul.f32 (!%p3228_p5), 0.03125, %v2844_v44 }
0x157c   : > { %2834 = vst.msk [vmem:[#allocation2 + $0x18] sm:$0xff] %vm589_vm5, %v2830_v42  ;;  %v2848_v36 = vsel (!%p3228_p5), %vm589_vm5, %v2830_v42, 0.0  ;;  %v2851_v48 = vmul.f32 (!%p3228_p5), 0.03125, %v2841_v62 }
0x157d   : > { %2833 = vst.msk [vmem:[#allocation2 + $0x10] sm:$0xff] %vm589_vm5, %v2829_v21  ;;  %v2845_v35 = vsel (!%p3228_p5), %vm589_vm5, %v2829_v21, 0.0  ;;  %2849 = vadd.xlane.f32.xlu1 (!%p3228_p5), %v2848_v36  ;;  %v2856_v9 = vsub.f32 (!%p3228_p5), %v2828_v32, %v2852_v47 }
0x157e   : > { %2846 = vadd.xlane.f32.xlu0 %v2845_v35  ;;  %v2855_v37 = vsub.f32 %v2827_v33, %v2851_v48 }
0x157f   : > { %v2860_v54 = vmul.f32 %v2856_v9, %v2856_v9 }
0x1580   : > { %v2859_v51 = vmul.f32 %v2855_v37, %v2855_v37 }
0x1581   : > { %v2866_v63 = vsel %vm589_vm5, %v2860_v54, 0.0 }
0x1582   : > { %v2863_v61 = vsel %vm589_vm5, %v2859_v51, 0.0 }
0x1583   : > { %2864 = vadd.xlane.f32.xlu0 %v2863_v61 }
0x1587   : > { %2867 = vadd.xlane.f32.xlu0 %v2866_v63 }
0x160a   : > { %v2850_v8 = vpop.xlane.xlu1 %2849 }
0x160b   : > { %v2847_v49 = vpop.xlane.xlu0 %2846  ;;  %v2854_v50 = vmul.f32 0.03125, %v2850_v8 }
0x160c   : > { %v2853_v45 = vmul.f32 0.03125, %v2847_v49 }
0x160d   : > { %v2858_v56 = vsub.f32 %v2830_v42, %v2854_v50 }
0x160e   : > { %v2857_v55 = vsub.f32 %v2829_v21, %v2853_v45  ;;  %v2914_v21 = vrot.slane %v4002_v0, %v2437_v19 }
0x160f   : > { %v2862_v2 = vmul.f32 %v2858_v56, %v2858_v56 }
0x1610   : > { %v2861_v1 = vmul.f32 %v2857_v55, %v2857_v55  ;;  %v2865_v15 = vpop.xlane.xlu0 %2864 }
0x1611   : > { %v2872_v4 = vsel %vm589_vm5, %v2862_v2, 0.0  ;;  %v2875_v16 = vmul.f32 0.03125, %v2865_v15 }
0x1612   : > { %v2869_v3 = vsel %vm589_vm5, %v2861_v1, 0.0 }
0x1613   : > { %2870 = vadd.xlane.f32.xlu1 %v2869_v3  ;;  %v2879_v17 = vadd.f32 1e-06, %v2875_v16 }
0x1614   : > { %v2868_v39 = vpop.xlane.xlu0 %2867 }
0x1615   : > { %3881 = vrsqrt.f32 %v2879_v17  ;;  %v2876_v11 = vmul.f32 0.03125, %v2868_v39 }
0x1617   : > { %2873 = vadd.xlane.f32.xlu1 %v2872_v4  ;;  %v2880_v5 = vadd.f32 1e-06, %v2876_v11 }
0x161f   : > { %v3882_v22 = vpop.eup %3881 }
0x1620   : > { %v2887_v23 = vmul.f32 %v3882_v22, %v2855_v37 }
0x1622   : > { %v2895_v26 = vmul.f32 %v2894_v38, %v2887_v23 }
0x1624   : > { %v2903_v30 = vadd.f32 %v2902_v24, %v2895_v26 }
0x1626   : > { %3547 = vmatprep.mubr.msk.f32.mxu0 %vm589_vm5, %v2903_v30 }
0x16a0   : > { %v2871_v14 = vpop.xlane.xlu1 %2870 }
0x16a1   : > { %v2877_v13 = vmul.f32 0.03125, %v2871_v14 }
0x16a3   : > { %v2881_v59 = vadd.f32 1e-06, %v2877_v13 }
0x16a4   : > { %v2874_v41 = vpop.xlane.xlu1 %2873 }
0x16a5   : > { %3883 = vrsqrt.f32 %v2881_v59  ;;  %v2878_v6 = vmul.f32 0.03125, %v2874_v41 }
0x16a6   : > { %3885 = vrsqrt.f32 %v2880_v5 }
0x16a7   : > { %v2882_v18 = vadd.f32 1e-06, %v2878_v6 }
0x16a9   : > { %3887 = vrsqrt.f32 %v2882_v18 }
0x16af   : > { %v3884_v28 = vpop.eup %3883 }
0x16b0   : > { %v3886_v29 = vpop.eup %3885  ;;  %v2889_v31 = vmul.f32 %v3884_v28, %v2857_v55 }
0x16b1   : > { %v2888_v32 = vmul.f32 %v3886_v29, %v2856_v9 }
0x16b2   : > { %v2897_v33 = vmul.f32 %v2894_v38, %v2889_v31 }
0x16b3   : > { %v3888_v34 = vpop.eup %3887  ;;  %v2896_v60 = vmul.f32 %v2894_v38, %v2888_v32 }
0x16b4   : > { %v2905_v53 = vadd.f32 %v2902_v24, %v2897_v33  ;;  %v2890_v43 = vmul.f32 %v3888_v34, %v2858_v56 }
0x16b5   : > { %v2904_v58 = vadd.f32 %v2902_v24, %v2896_v60 }
0x16b6   : > { %3550 = vmatprep.mubr.msk.f32.mxu1 %vm589_vm5, %v2905_v53  ;;  %v2898_v42 = vmul.f32 %v2894_v38, %v2890_v43 }
0x16b7   : > { %3548 = vmatmul.mubr.msk.f32.vlgmr.msra.gmra.mrb[0].mxu0 %vm589_vm5, %v2904_v58 }
0x16b8   : > { %v2906_v40 = vadd.f32 %v2902_v24, %v2898_v42 }
0x16ba   : > { %3551 = vmatmul.mubr.msk.f32.vlgmr.msra.gmra.mrb[0].mxu1 %vm589_vm5, %v2906_v40 }
0x178a   : > { %v3549_v25 = vpop.f32.mrb[0].mxu0 }
0x178b   : > { %v4475_v27 = vadd.f32 %v3549_v25, %v2914_v21  ;;  %v2993_v35 = vpop.f32.mrb[1].mxu0 }
0x178c   : > { %v4477_v36 = vadd.f32 %v2993_v35, %v2914_v21 }
0x178d   : > { %v3552_v62 = vpop.f32.mrb[0].mxu1  ;;  %v3016_v44 = vsel %vm3012_vm11, %v4475_v27, -inf }
0x178e   : > { %v4481_v48 = vadd.f32 %v3552_v62, %v2914_v21  ;;  %3017 = vmax.xlane.f32.xlu1 %v3016_v44  ;;  %v3003_v47 = vpop.f32.mrb[1].mxu1  ;;  %v3013_v57 = vsel %vm3012_vm11, %v4477_v36, -inf }
0x178f   : > { %v3004_v37 = vadd.f32 %v3003_v47, %v2914_v21  ;;  %3014 = vmax.xlane.f32.xlu0 %v3013_v57 }
0x1790   : > { %v3022_v0 = vsel %vm3012_vm11, %v4481_v48, -inf }
0x1791   : > { %v3019_v19 = vsel %vm3012_vm11, %v3004_v37, -inf }
0x1792   : > { %3023 = vmax.xlane.f32.xlu1 %v3022_v0 }
0x1793   : > { %3020 = vmax.xlane.f32.xlu0 %v3019_v19 }
0x181b   : > { %v3018_v9 = vpop.xlane.xlu1 %3017 }
0x181c   : > { %v3026_v49 = vsub.f32 %v4475_v27, %v3018_v9  ;;  %v3015_v8 = vpop.xlane.xlu0 %3014 }
0x181d   : > { %v3025_v45 = vsub.f32 %v4477_v36, %v3015_v8 }
0x181e   : > { %v3031_v50 = vmul.f32 1.442695, %v3026_v49 }
0x181f   : > { %v3029_v51 = vmul.f32 1.442695, %v3025_v45  ;;  %v3024_v54 = vpop.xlane.xlu1 %3023 }
0x1820   : > { %3889 = vpow2.f32 %v3031_v50  ;;  %v3028_v55 = vsub.f32 %v4481_v48, %v3024_v54  ;;  %v3021_v56 = vpop.xlane.xlu0 %3020 }
0x1821   : > { %3891 = vpow2.f32 %v3029_v51  ;;  %v3027_v61 = vsub.f32 %v3004_v37, %v3021_v56 }
0x1822   : > { %v3035_v63 = vmul.f32 1.442695, %v3028_v55 }
0x1823   : > { %v3033_v1 = vmul.f32 1.442695, %v3027_v61 }
0x1824   : > { %3893 = vpow2.f32 %v3035_v63 }
0x1825   : > { %3895 = vpow2.f32 %v3033_v1 }
0x182a   : > { %v3890_v2 = vpop.eup %3889 }
0x182b   : > { %v3892_v3 = vpop.eup %3891  ;;  %v3040_v4 = vsel %vm3012_vm11, %v3890_v2, 0.0 }
0x182c   : > { %3041 = vadd.xlane.f32.xlu1 %v3040_v4  ;;  %v3037_v7 = vsel %vm3012_vm11, %v3892_v3, 0.0 }
0x182d   : > { %3038 = vadd.xlane.f32.xlu0 %v3037_v7 }
0x182e   : > { %v3894_v10 = vpop.eup %3893 }
0x182f   : > { %v3896_v20 = vpop.eup %3895  ;;  %v3046_v12 = vsel %vm3012_vm11, %v3894_v10, 0.0 }
0x1830   : > { %3047 = vadd.xlane.f32.xlu1 %v3046_v12  ;;  %v3043_v52 = vsel %vm3012_vm11, %v3896_v20, 0.0 }
0x1831   : > { %3044 = vadd.xlane.f32.xlu0 %v3043_v52 }
0x18b9   : > { %v3042_v46 = vpop.xlane.xlu1 %3041 }
0x18ba   : > { %3897 = vlog2.f32 %v3042_v46  ;;  %v3039_v15 = vpop.xlane.xlu0 %3038 }
0x18bb   : > { %3899 = vlog2.f32 %v3039_v15 }
0x18bd   : > { %v3048_v16 = vpop.xlane.xlu1 %3047 }
0x18be   : > { %3901 = vlog2.f32 %v3048_v16  ;;  %v3045_v17 = vpop.xlane.xlu0 %3044 }
0x18bf   : > { %3903 = vlog2.f32 %v3045_v17 }
0x18c4   : > { %v3898_v14 = vpop.eup %3897 }
0x18c5   : > { %v3900_v39 = vpop.eup %3899  ;;  %v3052_v13 = vmul.f32 0.6931472, %v3898_v14 }
0x18c6   : > { %v3050_v11 = vmul.f32 0.6931472, %v3900_v39 }
0x18c7   : > { %v3058_v59 = vadd.f32 %v3052_v13, %v3018_v9 }
0x18c8   : > { %v3902_v5 = vpop.eup %3901  ;;  %v3057_v41 = vadd.f32 %v3050_v11, %v3015_v8 }
0x18c9   : > { %v3904_v6 = vpop.eup %3903  ;;  %v3062_v18 = vsub.f32 %v4475_v27, %v3058_v59  ;;  %v3056_v38 = vmul.f32 0.6931472, %v3902_v5 }
0x18ca   : > { %v3061_v22 = vsub.f32 %v4477_v36, %v3057_v41  ;;  %v3054_v23 = vmul.f32 0.6931472, %v3904_v6 }
0x18cb   : > { %3066 = vst.msk [vmem:[%s4528_s11 + $0x8] sm:$0xff] %vm3012_vm11, %v3062_v18  ;;  %v3060_v24 = vadd.f32 %v3056_v38, %v3024_v54 }
0x18cc   : > { %3065 = vst.msk [vmem:[%s4528_s11] sm:$0xff] %vm3012_vm11, %v3061_v22  ;;  %v3059_v26 = vadd.f32 %v3054_v23, %v3021_v56 }
0x18cd   : > { %v3064_v28 = vsub.f32 %v4481_v48, %v3060_v24 }
0x18ce   : > { %v3063_v29 = vsub.f32 %v3004_v37, %v3059_v26 }
0x18cf   : > { %3068 = vst.msk [vmem:[%s4528_s11 + $0x18] sm:$0xff] %vm3012_vm11, %v3064_v28 }
0x18d0   : > { %3067 = vst.msk [vmem:[%s4528_s11 + $0x10] sm:$0xff] %vm3012_vm11, %v3063_v29 }
0x18d1 PF: > { %s21_s17 = sadd.s32 1, %s3911_s17  }
0x18d2   : > { %p18_p6 = scmp.ge.s32.totalorder %s21_s17, 4  }
0x18d4   :  { %20 = sbr.rel (!%p18_p6) target bundleno = 1 (0x1), region = 110 }

</bundles_post_ra>
